<compile_context>
chip_gen: v7x
topology: tpu7x:2x2x1
jax: 0.10.0
libtpu: 0.0.40
codegen_flags: <defaults>
</compile_context>

<pallas_src>
import jax
import jax.numpy as jnp
from jax.experimental import pallas as pl
from jax.experimental.pallas import tpu as pltpu


# ----------------------------------------------------------------------------
# Single fused Pallas kernel
# ----------------------------------------------------------------------------
def _full_embedding_kernel(x_ref, psi_ref, phi_ref,
                           l1_ref, l2_ref, s2_ref, gr_ref, gi_ref,
                           u1s_ref):
    T = phi_ref.shape[0]
    FT = psi_ref.shape[1] // 2
    F = FT // T
    B = x_ref.shape[0]
    ROWP = u1s_ref.shape[0] // F           # sublane-aligned rows reserved per filter
    inv_t = 1.0 / T

    x = x_ref[...]                          # (B, T)
    psi = psi_ref[...]                      # (T, 2*F*T) = [re_0..re_{F-1} | im_0..im_{F-1}]
    phi = phi_ref[...]                      # (T, T) circulant lowpass

    # ---- order 1: fused wavelet transform (all filters, re & im, one matmul) ----
    w = jnp.dot(x, psi, preferred_element_type=jnp.float32)   # (B, 2*F*T)
    re = w[:, :FT]                                            # (B, F*T)
    im = w[:, FT:]                                            # (B, F*T)
    u1 = jnp.sqrt(re * re + im * im)                          # (B, F*T)   |x * psi_f|

    # ---- phase harmonics: C = (1/T) Z Z^H per batch element (F x F Gram matrix);
    # diag -> 'harmonic', strict upper triangle -> 'mixed' (selected in the wrapper).
    re3 = re.reshape(B, F, T)
    im3 = im.reshape(B, F, T)
    rr = jnp.einsum('bft,bgt->bfg', re3, re3, preferred_element_type=jnp.float32)
    ii = jnp.einsum('bft,bgt->bfg', im3, im3, preferred_element_type=jnp.float32)
    ir = jnp.einsum('bft,bgt->bfg', im3, re3, preferred_element_type=jnp.float32)
    ri = jnp.einsum('bft,bgt->bfg', re3, im3, preferred_element_type=jnp.float32)
    gr_ref[...] = (rr + ii) * inv_t
    gi_ref[...] = (ir - ri) * inv_t

    # ---- repack |x*psi_f| as rows of a (F*ROWP, T) matrix so the lowpass and the
    # order-2 transform run as single big-M matmuls (valid rows: f*ROWP + b).
    u1s_ref[...] = jnp.zeros_like(u1s_ref)
    for f in range(F):                      # static unroll; aligned masked stores
        u1s_ref[f * ROWP:f * ROWP + B, :] = u1[:, f * T:(f + 1) * T]
    u1m = u1s_ref[...]                      # (F*ROWP, T)

    # ---- order 1 reductions: S1 = lowpass(U1); L1 and squared L2 norms over time.
    s1 = jnp.dot(u1m, phi, preferred_element_type=jnp.float32)     # (F*ROWP, T)
    l1_ref[...] = jnp.sum(jnp.abs(s1), axis=-1, keepdims=True)     # torch.norm p=1
    l2_ref[...] = jnp.sum(s1 * s1, axis=-1, keepdims=True)         # torch.norm p=2 ** 2

    # ---- order 2: every |x*psi_j1| against every psi_j2 in one matmul; the modulus
    # sqrt cancels inside ||U2||_2^2 so it is skipped.
    w2 = jnp.dot(u1m, psi, preferred_element_type=jnp.float32)     # (F*ROWP, 2*F*T)
    re2 = w2[:, :FT].reshape(F * ROWP, F, T)
    im2 = w2[:, FT:].reshape(F * ROWP, F, T)
    s2_ref[...] = jnp.sum(re2 * re2 + im2 * im2, axis=-1)          # (F*ROWP, F)


# ----------------------------------------------------------------------------
# Deterministic synthetic filter bank, packed for one fused MXU weight (glue)
# ----------------------------------------------------------------------------
def make_filter_bank(T, J, Q):
    n = jnp.arange(T)
    tc = jnp.where(n > T // 2, n - T, n).astype(jnp.float32)     # centered time
    idx = (n[None, :] - n[:, None]) % T     # circulant: M[m, k] = h[(k - m) mod T]
    psis_r, psis_i = [], []
    for j in range(J * Q):
        xi = 0.4 * (2.0 ** (-(j / Q)))      # center frequency (cycles / sample)
        sigma = 2.0 * (2.0 ** (j / Q))      # envelope width
        g = jnp.exp(-0.5 * (tc / sigma) ** 2)
        g = g / jnp.sum(g)
        psis_r.append((g * jnp.cos(2.0 * jnp.pi * xi * tc))[idx])
        psis_i.append((g * jnp.sin(2.0 * jnp.pi * xi * tc))[idx])
    # (T, 2*F*T): all real blocks, then all imaginary blocks -> one fused weight.
    psi = jnp.concatenate(psis_r + psis_i, axis=1).astype(jnp.float32)
    g = jnp.exp(-0.5 * (tc / (2.0 ** J)) ** 2)
    phi = ((g / jnp.sum(g))[idx]).astype(jnp.float32)            # (T, T) lowpass
    return psi, phi


# ----------------------------------------------------------------------------
# FullEmbedding wrapper
# ----------------------------------------------------------------------------
class FullEmbedding:
    def __init__(self, T, J, Q, scatt_orders=(0, 1, 2),
                 phe_coeffs=("harmonic", "mixed")):
        self.T, self.J, self.Q = T, J, Q
        self.scatt_orders = scatt_orders
        self.phe_coeffs = phe_coeffs
        self.F = J * Q
        self.psi, self.phi = make_filter_bank(T, J, Q)
        pairs = [(a, b) for a in range(self.F) for b in range(self.F) if b > a]
        self.F2 = len(pairs)
        self.f1_idx = jnp.array([p[0] for p in pairs], jnp.int32)
        self.f2_idx = jnp.array([p[1] for p in pairs], jnp.int32)

    def __call__(self, x):
        # format(): accept (B, C, T) real or (B, C, T, 2) complex; real part only.
        if x.ndim == 4:
            x = x[..., 0]
        B0, C, T = x.shape
        assert T == self.T
        B = B0 * C
        xf = x.reshape(B, T).astype(jnp.float32)
        F, F2 = self.F, self.F2
        f32 = jnp.float32
        rowp = ((B + 7) // 8) * 8            # sublane-aligned rows per filter

        l1r, l2r, s2r, gr, gi = pl.pallas_call(
            _full_embedding_kernel,
            out_shape=(
                jax.ShapeDtypeStruct((F * rowp, 1), f32),   # L1 of S1
                jax.ShapeDtypeStruct((F * rowp, 1), f32),   # L2^2 of S1
                jax.ShapeDtypeStruct((F * rowp, F), f32),   # ||U2||_2^2 per (j1, j2)
                jax.ShapeDtypeStruct((B, F, F), f32),       # Re (1/T) Z Z^H
                jax.ShapeDtypeStruct((B, F, F), f32),       # Im (1/T) Z Z^H
            ),
            scratch_shapes=[pltpu.VMEM((F * rowp, T), f32)],
        )(xf, self.psi, self.phi)

        # -------- tiny re-ordering glue (O(F^2 * B) scalars), plain JAX --------
        l1 = l1r.reshape(F, rowp)[:, :B].reshape(F * B)              # coef-major
        l2 = l2r.reshape(F, rowp)[:, :B].reshape(F * B)
        s2 = s2r.reshape(F, rowp, F)[:, :B, :][self.f1_idx, :, self.f2_idx]  # (F2, B)
        s2 = s2.reshape(F2 * B)
        diag = jnp.arange(F)
        hr = gr[:, diag, diag].T.reshape(F * B)                      # harmonic
        hi = jnp.zeros_like(hr)              # Im(z * conj(z)) == 0, produced here
        mr = gr[:, self.f1_idx, self.f2_idx].T.reshape(F2 * B)       # mixed (real)
        mi = gi[:, self.f1_idx, self.f2_idx].T.reshape(F2 * B)       # mixed (imag)

        # -------- assemble exactly like FullEmbedding.forward (glue) --------
        if 1 in self.scatt_orders:
            scat1 = jnp.stack([l1, l2], axis=-1)[None, None]                  # (1,1,F*B,2)
            scat1 = jnp.concatenate([scat1, jnp.zeros_like(scat1)], axis=-2)  # (1,1,2*F*B,2)
        else:
            scat1 = jnp.zeros((0,), f32)

        if 2 in self.scatt_orders:
            scat2 = s2[None, None]                                            # (1,1,F2*B)
            scat2 = jnp.concatenate([scat2, jnp.zeros_like(scat2)], axis=-1)  # (1,1,2*F2*B)
        else:
            scat2 = jnp.zeros((0,), f32)

        phe0 = jnp.stack([hr, hi], axis=-1)[None, None]
        phe1 = jnp.stack([mr, mi], axis=-1)[None, None]

        fst_ord = [scat1, phe0]
        snd_ord = [scat2, phe1]
        return fst_ord, snd_ord


if __name__ == "__main__":
    B, C, T = 2, 1, 128
    J, Q = 4, 1
    key = jax.random.PRNGKey(0)
    x = jax.random.normal(key, (B, C, T), dtype=jnp.float32)

    emb = FullEmbedding(T, J, Q)
    (scat1, phe0), (scat2, phe1) = emb(x)
    jax.block_until_ready((scat1, phe0, scat2, phe1))

    F = J * Q
    F2 = F * (F - 1) // 2
    assert scat1.shape == (1, 1, 2 * F * B * C, 2)
    assert phe0.shape == (1, 1, F * B * C, 2)
    assert scat2.shape == (1, 1, 2 * F2 * B * C)
    assert phe1.shape == (1, 1, F2 * B * C, 2)
    print("KERNEL_OK")
</pallas_src>

<mosaic_0001>
module attributes {stable_mosaic.version = 11 : i64} {
  func.func @_full_embedding_kernel(%arg0: memref<2x128xf32, #tpu.memory_space<vmem>>, %arg1: memref<128x1024xf32, #tpu.memory_space<vmem>>, %arg2: memref<128x128xf32, #tpu.memory_space<vmem>>, %arg3: memref<32x1xf32, #tpu.memory_space<vmem>>, %arg4: memref<32x1xf32, #tpu.memory_space<vmem>>, %arg5: memref<32x4xf32, #tpu.memory_space<vmem>>, %arg6: memref<2x4x4xf32, #tpu.memory_space<vmem>>, %arg7: memref<2x4x4xf32, #tpu.memory_space<vmem>>, %arg8: memref<32x128xf32, #tpu.memory_space<vmem>>) attributes {dimension_semantics = [], scalar_prefetch = 0 : i64, scratch_operands = 1 : i64, tpu.core_type = #tpu.core_type<tc>} {
    %c0 = arith.constant 0 : index
    %c0_0 = arith.constant 0 : index
    %0 = vector.load %arg0[%c0, %c0_0] : memref<2x128xf32, #tpu.memory_space<vmem>>, vector<2x128xf32>
    %c0_1 = arith.constant 0 : index
    %c0_2 = arith.constant 0 : index
    %1 = vector.load %arg1[%c0_1, %c0_2] : memref<128x1024xf32, #tpu.memory_space<vmem>>, vector<128x1024xf32>
    %c0_3 = arith.constant 0 : index
    %c0_4 = arith.constant 0 : index
    %2 = vector.load %arg2[%c0_3, %c0_4] : memref<128x128xf32, #tpu.memory_space<vmem>>, vector<128x128xf32>
    %cst = arith.constant dense<0.000000e+00> : vector<2x1024xf32>
    %3 = tpu.matmul %0, %1, %cst {dimension_numbers = #tpu.dot_dimension_numbers<[1], [0], [0], [1], [0, 0, 1, 1], [], []>} : vector<2x128xf32>, vector<128x1024xf32>, vector<2x1024xf32> -> vector<2x1024xf32>
    %4 = vector.extract_strided_slice %3 {offsets = [0, 0], sizes = [2, 512], strides = [1, 1]} : vector<2x1024xf32> to vector<2x512xf32>
    %5 = vector.extract_strided_slice %3 {offsets = [0, 512], sizes = [2, 512], strides = [1, 1]} : vector<2x1024xf32> to vector<2x512xf32>
    %6 = arith.mulf %4, %4 : vector<2x512xf32>
    %7 = arith.mulf %5, %5 : vector<2x512xf32>
    %8 = arith.addf %6, %7 : vector<2x512xf32>
    %9 = math.sqrt %8 : vector<2x512xf32>
    %10 = vector.shape_cast %4 : vector<2x512xf32> to vector<2x4x128xf32>
    %11 = vector.shape_cast %5 : vector<2x512xf32> to vector<2x4x128xf32>
    "tpu.trace_start"() <{level = 10 : i32, message = "bft,bgt->bfg"}> : () -> ()
    %cst_5 = arith.constant dense<0.000000e+00> : vector<2x4x4xf32>
    %12 = tpu.matmul %10, %10, %cst_5 {dimension_numbers = #tpu.dot_dimension_numbers<[2], [2], [1], [1], [0, 0, 0, 1, 1, 1], [0], [0]>} : vector<2x4x128xf32>, vector<2x4x128xf32>, vector<2x4x4xf32> -> vector<2x4x4xf32>
    %cst_6 = arith.constant dense<0.000000e+00> : vector<2x4x4xf32>
    %13 = tpu.matmul %11, %11, %cst_6 {dimension_numbers = #tpu.dot_dimension_numbers<[2], [2], [1], [1], [0, 0, 0, 1, 1, 1], [0], [0]>} : vector<2x4x128xf32>, vector<2x4x128xf32>, vector<2x4x4xf32> -> vector<2x4x4xf32>
    %cst_7 = arith.constant dense<0.000000e+00> : vector<2x4x4xf32>
    %14 = tpu.matmul %11, %10, %cst_7 {dimension_numbers = #tpu.dot_dimension_numbers<[2], [2], [1], [1], [0, 0, 0, 1, 1, 1], [0], [0]>} : vector<2x4x128xf32>, vector<2x4x128xf32>, vector<2x4x4xf32> -> vector<2x4x4xf32>
    %cst_8 = arith.constant dense<0.000000e+00> : vector<2x4x4xf32>
    %15 = tpu.matmul %10, %11, %cst_8 {dimension_numbers = #tpu.dot_dimension_numbers<[2], [2], [1], [1], [0, 0, 0, 1, 1, 1], [0], [0]>} : vector<2x4x128xf32>, vector<2x4x128xf32>, vector<2x4x4xf32> -> vector<2x4x4xf32>
    "tpu.trace_stop"() : () -> ()
    %16 = arith.addf %12, %13 : vector<2x4x4xf32>
    %cst_9 = arith.constant 7.812500e-03 : f32
    %17 = vector.broadcast %cst_9 : f32 to vector<2x4x4xf32>
    %18 = arith.mulf %16, %17 : vector<2x4x4xf32>
    %c0_10 = arith.constant 0 : index
    %c0_11 = arith.constant 0 : index
    %c0_12 = arith.constant 0 : index
    %19 = vector.load %arg6[%c0_10, %c0_11, %c0_12] : memref<2x4x4xf32, #tpu.memory_space<vmem>>, vector<2x4x4xf32>
    tpu.vector_store %arg6[%c0_10, %c0_11, %c0_12], %18 {strides = array<i32>} : memref<2x4x4xf32, #tpu.memory_space<vmem>>, vector<2x4x4xf32>,
    %20 = arith.subf %14, %15 : vector<2x4x4xf32>
    %cst_13 = arith.constant 7.812500e-03 : f32
    %21 = vector.broadcast %cst_13 : f32 to vector<2x4x4xf32>
    %22 = arith.mulf %20, %21 : vector<2x4x4xf32>
    %c0_14 = arith.constant 0 : index
    %c0_15 = arith.constant 0 : index
    %c0_16 = arith.constant 0 : index
    %23 = vector.load %arg7[%c0_14, %c0_15, %c0_16] : memref<2x4x4xf32, #tpu.memory_space<vmem>>, vector<2x4x4xf32>
    tpu.vector_store %arg7[%c0_14, %c0_15, %c0_16], %22 {strides = array<i32>} : memref<2x4x4xf32, #tpu.memory_space<vmem>>, vector<2x4x4xf32>,
    %cst_17 = arith.constant 0.000000e+00 : f32
    %24 = vector.broadcast %cst_17 : f32 to vector<32x128xf32>
    %c0_18 = arith.constant 0 : index
    %c0_19 = arith.constant 0 : index
    %25 = vector.load %arg8[%c0_18, %c0_19] : memref<32x128xf32, #tpu.memory_space<vmem>>, vector<32x128xf32>
    tpu.vector_store %arg8[%c0_18, %c0_19], %24 {strides = array<i32>} : memref<32x128xf32, #tpu.memory_space<vmem>>, vector<32x128xf32>,
    %26 = vector.extract_strided_slice %9 {offsets = [0, 0], sizes = [2, 128], strides = [1, 1]} : vector<2x512xf32> to vector<2x128xf32>
    %c0_20 = arith.constant 0 : index
    %c0_21 = arith.constant 0 : index
    %27 = vector.load %arg8[%c0_20, %c0_21] : memref<32x128xf32, #tpu.memory_space<vmem>>, vector<2x128xf32>
    tpu.vector_store %arg8[%c0_20, %c0_21], %26 {strides = array<i32>} : memref<32x128xf32, #tpu.memory_space<vmem>>, vector<2x128xf32>,
    %28 = vector.extract_strided_slice %9 {offsets = [0, 128], sizes = [2, 128], strides = [1, 1]} : vector<2x512xf32> to vector<2x128xf32>
    %c8 = arith.constant 8 : index
    %c0_22 = arith.constant 0 : index
    %29 = vector.load %arg8[%c8, %c0_22] : memref<32x128xf32, #tpu.memory_space<vmem>>, vector<2x128xf32>
    tpu.vector_store %arg8[%c8, %c0_22], %28 {strides = array<i32>} : memref<32x128xf32, #tpu.memory_space<vmem>>, vector<2x128xf32>,
    %30 = vector.extract_strided_slice %9 {offsets = [0, 256], sizes = [2, 128], strides = [1, 1]} : vector<2x512xf32> to vector<2x128xf32>
    %c16 = arith.constant 16 : index
    %c0_23 = arith.constant 0 : index
    %31 = vector.load %arg8[%c16, %c0_23] : memref<32x128xf32, #tpu.memory_space<vmem>>, vector<2x128xf32>
    tpu.vector_store %arg8[%c16, %c0_23], %30 {strides = array<i32>} : memref<32x128xf32, #tpu.memory_space<vmem>>, vector<2x128xf32>,
    %32 = vector.extract_strided_slice %9 {offsets = [0, 384], sizes = [2, 128], strides = [1, 1]} : vector<2x512xf32> to vector<2x128xf32>
    %c24 = arith.constant 24 : index
    %c0_24 = arith.constant 0 : index
    %33 = vector.load %arg8[%c24, %c0_24] : memref<32x128xf32, #tpu.memory_space<vmem>>, vector<2x128xf32>
    tpu.vector_store %arg8[%c24, %c0_24], %32 {strides = array<i32>} : memref<32x128xf32, #tpu.memory_space<vmem>>, vector<2x128xf32>,
    %c0_25 = arith.constant 0 : index
    %c0_26 = arith.constant 0 : index
    %34 = vector.load %arg8[%c0_25, %c0_26] : memref<32x128xf32, #tpu.memory_space<vmem>>, vector<32x128xf32>
    %cst_27 = arith.constant dense<0.000000e+00> : vector<32x128xf32>
    %35 = tpu.matmul %34, %2, %cst_27 {dimension_numbers = #tpu.dot_dimension_numbers<[1], [0], [0], [1], [0, 0, 1, 1], [], []>} : vector<32x128xf32>, vector<128x128xf32>, vector<32x128xf32> -> vector<32x128xf32>
    %36 = math.absf %35 : vector<32x128xf32>
    %cst_28 = arith.constant dense<0.000000e+00> : vector<32xf32>
    %37 = vector.multi_reduction <add>, %36, %cst_28 [1] : vector<32x128xf32> to vector<32xf32>
    %38 = vector.shape_cast %37 : vector<32xf32> to vector<32x1xf32>
    %c0_29 = arith.constant 0 : index
    %c0_30 = arith.constant 0 : index
    %39 = vector.load %arg3[%c0_29, %c0_30] : memref<32x1xf32, #tpu.memory_space<vmem>>, vector<32x1xf32>
    tpu.vector_store %arg3[%c0_29, %c0_30], %38 {strides = array<i32>} : memref<32x1xf32, #tpu.memory_space<vmem>>, vector<32x1xf32>,
    %40 = arith.mulf %35, %35 : vector<32x128xf32>
    %cst_31 = arith.constant dense<0.000000e+00> : vector<32xf32>
    %41 = vector.multi_reduction <add>, %40, %cst_31 [1] : vector<32x128xf32> to vector<32xf32>
    %42 = vector.shape_cast %41 : vector<32xf32> to vector<32x1xf32>
    %c0_32 = arith.constant 0 : index
    %c0_33 = arith.constant 0 : index
    %43 = vector.load %arg4[%c0_32, %c0_33] : memref<32x1xf32, #tpu.memory_space<vmem>>, vector<32x1xf32>
    tpu.vector_store %arg4[%c0_32, %c0_33], %42 {strides = array<i32>} : memref<32x1xf32, #tpu.memory_space<vmem>>, vector<32x1xf32>,
    %cst_34 = arith.constant dense<0.000000e+00> : vector<32x1024xf32>
    %44 = tpu.matmul %34, %1, %cst_34 {dimension_numbers = #tpu.dot_dimension_numbers<[1], [0], [0], [1], [0, 0, 1, 1], [], []>} : vector<32x128xf32>, vector<128x1024xf32>, vector<32x1024xf32> -> vector<32x1024xf32>
    %45 = vector.extract_strided_slice %44 {offsets = [0, 0], sizes = [32, 512], strides = [1, 1]} : vector<32x1024xf32> to vector<32x512xf32>
    %46 = vector.shape_cast %45 : vector<32x512xf32> to vector<32x4x128xf32>
    %47 = vector.extract_strided_slice %44 {offsets = [0, 512], sizes = [32, 512], strides = [1, 1]} : vector<32x1024xf32> to vector<32x512xf32>
    %48 = vector.shape_cast %47 : vector<32x512xf32> to vector<32x4x128xf32>
    %49 = arith.mulf %46, %46 : vector<32x4x128xf32>
    %50 = arith.mulf %48, %48 : vector<32x4x128xf32>
    %51 = arith.addf %49, %50 : vector<32x4x128xf32>
    %cst_35 = arith.constant dense<0.000000e+00> : vector<32x4xf32>
    %52 = vector.multi_reduction <add>, %51, %cst_35 [2] : vector<32x4x128xf32> to vector<32x4xf32>
    %c0_36 = arith.constant 0 : index
    %c0_37 = arith.constant 0 : index
    %53 = vector.load %arg5[%c0_36, %c0_37] : memref<32x4xf32, #tpu.memory_space<vmem>>, vector<32x4xf32>
    tpu.vector_store %arg5[%c0_36, %c0_37], %52 {strides = array<i32>} : memref<32x4xf32, #tpu.memory_space<vmem>>, vector<32x4xf32>,
    return
  }
}

</mosaic_0001>

<bundles_post_ra>
// kernel: tpu_custom_call.1
= control target key start
LH: loop header
LB: loop body
LE: loop exit
PB: predicated region body
PF: predicated region fallthrough
CT: control target
= control target key end

     0   :  { %13 = vsyncpa [#allocation4], 0  ;;  %s4200_s0 = inlined_call_operand.hbm [shape: f32[2,128], index: 0, kind: input, shape index: {}]   ;;  %s4201_s1 = inlined_call_operand.hbm [shape: f32[128,1024], index: 1, kind: input, shape index: {}]   ;;  %s4202_s2 = inlined_call_operand.hbm [shape: f32[128,128], index: 2, kind: input, shape index: {}]   ;;  %s4203_s3 = inlined_call_operand.vmem [shape: f32[32,1], index: 3, kind: output, shape index: {0}]   ;;  %s4204_s4 = inlined_call_operand.vmem [shape: f32[32,1], index: 4, kind: output, shape index: {1}]   ;;  %s4205_s5 = inlined_call_operand.vmem [shape: f32[32,4], index: 5, kind: output, shape index: {2}]   ;;  %s4206_s6 = inlined_call_operand.hbm [shape: f32[2,4,4], index: 6, kind: output, shape index: {3}]   ;;  %s4207_s7 = inlined_call_operand.hbm [shape: f32[2,4,4], index: 7, kind: output, shape index: {4}]  }
   0x1   :  { %14 = vsyncpa [#allocation7], 0 }
   0x2   :  { %15 = vsyncpa [#allocation5], 0 }
   0x3   :  { %16 = vsyncpa [#allocation11], 0  ;;  %s3187_s24 = smov [#allocation6]   ;;  %s3069_s28 = scalar_lea.hbm %s4201_s1, 16384 }
   0x4   :  { %s32_s25 = sshll.u32 %s3187_s24, 4  ;;  %p3070_p0 = scmp.ne.s32.totalorder %s4201_s1, %s3069_s28  ;;  %s33_s25 = int_to_ptr.vmem [resolvable:$true] %s32_s25 }
   0x5   :  { %p3073_p1 = scmp.lt.u32.totalorder %s3069_s28, %s4201_s1 }
   0x7   :  { %p3075_p2 = pnand %p3073_p1, %p3070_p0 }
   0x9   :  { %3078 = shalt.err (!%p3075_p2)
}
   0xa   :  { %s3079_s10 = scalar_lea.vmem %s33_s25, 16384  ;;  %p3084_p4 = scmp.lt.s32.totalorder %s33_s25, %s33_s25 }
   0xb   :  { %p3080_p3 = scmp.ne.s32.totalorder %s33_s25, %s3079_s10  ;;  %p3085_p5 = scmp.lt.s32.totalorder %s3079_s10, %s3079_s10 }
   0xd   :  { %p3086_p6 = por %p3085_p5, %p3084_p4 }
   0xf   :  { %p3087_p7 = pnand %p3086_p6, %p3080_p3 }
  0x11   :  { %3090 = shalt.err (!%p3087_p7)
}
  0x12   :  { %s3188_s11 = smov 1024   ;;  %s3189_s12 = smov 64  }
  0x13   :  { %38 = dma.hbm_to_vmem [thread:$0]  %s4201_s1, 16384, %s33_s25, [#allocation7], %s3188_s11, %s3188_s11, %s3189_s12  }
  0x14   :  { %s3190_s15 = smov [#allocation3]   ;;  %s3191_s17 = smov [#allocation8]  }
  0x15   :  { %s23_s16 = sshll.u32 %s3190_s15, 4  ;;  %s44_s18 = sshll.u32 %s3191_s17, 4  ;;  %s24_s16 = int_to_ptr.vmem [resolvable:$true] %s23_s16  ;;  %s45_s18 = int_to_ptr.vmem [resolvable:$true] %s44_s18 }
  0x16   :  { %s3091_s21 = scalar_lea.hbm %s4200_s0, 32 }
  0x17   :  { %p3092_p8 = scmp.ne.s32.totalorder %s4200_s0, %s3091_s21  ;;  %p3095_p9 = scmp.lt.u32.totalorder %s3091_s21, %s4200_s0 }
  0x19   :  { %p3097_p10 = pnand %p3095_p9, %p3092_p8 }
  0x1b   :  { %3100 = shalt.err (!%p3097_p10)
}
  0x1c   :  { %s3101_s1 = scalar_lea.vmem %s24_s16, 32  ;;  %p3106_p12 = scmp.lt.s32.totalorder %s24_s16, %s24_s16 }
  0x1d   :  { %p3102_p11 = scmp.ne.s32.totalorder %s24_s16, %s3101_s1  ;;  %p3107_p13 = scmp.lt.s32.totalorder %s3101_s1, %s3101_s1 }
  0x1f   :  { %p3108_p0 = por %p3107_p13, %p3106_p12 }
  0x21   :  { %p3109_p1 = pnand %p3108_p0, %p3102_p11 }
  0x23   :  { %3112 = shalt.err (!%p3109_p1)
}
  0x24   :  { %26 = dma.hbm_to_vmem [thread:$0]  %s4200_s0, 32, %s24_s16, [#allocation4]  }
  0x25   :  { %s3113_s30 = scalar_lea.hbm %s4202_s2, 2048 }
  0x26   :  { %p3114_p2 = scmp.ne.s32.totalorder %s4202_s2, %s3113_s30  ;;  %p3117_p3 = scmp.lt.u32.totalorder %s3113_s30, %s4202_s2 }
  0x28   :  { %p3119_p4 = pnand %p3117_p3, %p3114_p2 }
  0x2a   :  { %3122 = shalt.err (!%p3119_p4)
}
  0x2b   :  { %s3123_s13 = scalar_lea.vmem %s45_s18, 2048  ;;  %p3128_p6 = scmp.lt.s32.totalorder %s45_s18, %s45_s18 }
  0x2c   :  { %p3124_p5 = scmp.ne.s32.totalorder %s45_s18, %s3123_s13  ;;  %p3129_p7 = scmp.lt.s32.totalorder %s3123_s13, %s3123_s13 }
  0x2e   :  { %p3130_p8 = por %p3129_p7, %p3128_p6 }
  0x30   :  { %p3131_p9 = pnand %p3130_p8, %p3124_p5 }
  0x32   :  { %3134 = shalt.err (!%p3131_p9)
}
  0x33   :  { %s3192_s0 = smov 128   ;;  %s3193_s14 = smov 8  }
  0x34   :  { %50 = dma.hbm_to_vmem [thread:$0]  %s4202_s2, 2048, %s45_s18, [#allocation7], %s3192_s0, %s3192_s0, %s3193_s14  }
  0x35   :  { %3179 = dma.done.wait [#allocation4], 32  }
  0x36   :  { %3180 = vsyncadd [#allocation4], 4294967264 }
  0x37   :  { %3181 = dma.done.wait [#allocation7], 18432  }
  0x38   :  { %3182 = vsyncadd [#allocation7], 4294948864  ;;  %v4208_v0 = vmov 0.0   ;;  %v62_v1 = vld [vmem:[#allocation6 + $0x8] sm:$0xff]  ;;  %v64_v3 = vld [vmem:[#allocation6 + $0x18] sm:$0xff]  ;;  %vm3195_vm0 = vmmov 0  }
  0x39   :  { %269 = vmatprep.mubr.f32.mxu0 %v4208_v0  ;;  %1150 = vst [vmem:[#allocation2] sm:$0xff] %v4208_v0  ;;  %1151 = vst [vmem:[#allocation2 + $0x8] sm:$0xff] %v4208_v0  ;;  %340 = vmatprep.mubr.f32.mxu1 %v4208_v0  ;;  %v70_v2 = vld [vmem:[#allocation6 + $0x48] sm:$0xff]  ;;  %v72_v5 = vld [vmem:[#allocation6 + $0x58] sm:$0xff]  ;;  %vm1141_vm9 = vcmask 27648   ;;  %vm2276_vm10 = vcmask 1043456  }
  0x3a   :  { %1152 = vst [vmem:[#allocation2 + $0x10] sm:$0xff] %v4208_v0  ;;  %1153 = vst [vmem:[#allocation2 + $0x18] sm:$0xff] %v4208_v0  ;;  %v3284_v4 = vpack.c.bf16 %v70_v2, %v62_v1  ;;  %v61_v6 = vld [vmem:[#allocation6] sm:$0xff]  ;;  %v3286_v8 = vpack.c.bf16 %v72_v5, %v64_v3  ;;  %v63_v10 = vld [vmem:[#allocation6 + $0x10] sm:$0xff]  ;;  %vm1259_vm11 = vcmask 7168   ;;  %s3198_s20 = smov [#allocation9]  }
  0x3b   :  { %v69_v7 = vld [vmem:[#allocation6 + $0x40] sm:$0xff]  ;;  %v71_v11 = vld [vmem:[#allocation6 + $0x50] sm:$0xff]  ;;  %v78_v12 = vld [vmem:[#allocation6 + $0x88] sm:$0xff]  ;;  %s2590_s21 = sshll.u32 %s3198_s20, 4  ;;  %s3199_s22 = smov [#allocation10]   ;;  %s2591_s21 = int_to_ptr.vmem [resolvable:$true] %s2590_s21 }
  0x3c   :  { %v3288_v9 = vpack.c.bf16 %v69_v7, %v61_v6  ;;  %2740 = vmatprep.subr.bf16.mxu0 %v3284_v4  ;;  %v3291_v13 = vpack.c.bf16 %v71_v11, %v63_v10  ;;  %v86_v14 = vld [vmem:[#allocation6 + $0xc8] sm:$0xff]  ;;  %v80_v15 = vld [vmem:[#allocation6 + $0x98] sm:$0xff]  ;;  %2772 = vmatprep.subr.bf16.mxu1 %v3286_v8  ;;  %v77_v19 = vld [vmem:[#allocation6 + $0x80] sm:$0xff]  ;;  %s2602_s23 = sshll.u32 %s3199_s22, 4  ;;  %s3135_s24 = scalar_lea.vmem %s2591_s21, 128  ;;  %s2603_s23 = int_to_ptr.vmem [resolvable:$true] %s2602_s23 }
  0x3d   :  { %v88_v16 = vld [vmem:[#allocation6 + $0xd8] sm:$0xff]  ;;  %v3295_v17 = vpack.c.bf16 %v86_v14, %v78_v12  ;;  %v85_v20 = vld [vmem:[#allocation6 + $0xc0] sm:$0xff]  ;;  %v79_v21 = vld [vmem:[#allocation6 + $0x90] sm:$0xff]  ;;  %p3136_p10 = scmp.ne.s32.totalorder %s2591_s21, %s3135_s24  ;;  %p3140_p11 = scmp.lt.s32.totalorder %s2591_s21, %s2591_s21 }
  0x3e   :  { %2742 = vmatpush1.bf16.msra.mxu0 %v3288_v9  ;;  %v3297_v18 = vpack.c.bf16 %v88_v16, %v80_v15  ;;  %2774 = vmatpush1.bf16.msra.mxu1 %v3291_v13  ;;  %v3300_v22 = vpack.c.bf16 %v85_v20, %v77_v19  ;;  %v87_v23 = vld [vmem:[#allocation6 + $0xd0] sm:$0xff]  ;;  %v94_v24 = vld [vmem:[#allocation6 + $0x108] sm:$0xff]  ;;  %v96_v28 = vld [vmem:[#allocation6 + $0x118] sm:$0xff]  ;;  %p3141_p12 = scmp.lt.s32.totalorder %s3135_s24, %s3135_s24 }
  0x3f   :  { %v102_v25 = vld [vmem:[#allocation6 + $0x148] sm:$0xff]  ;;  %2744 = vmatprep.subr.bf16.mxu0 %v3295_v17  ;;  %v3304_v26 = vpack.c.bf16 %v87_v23, %v79_v21  ;;  %v104_v29 = vld [vmem:[#allocation6 + $0x158] sm:$0xff]  ;;  %v93_v30 = vld [vmem:[#allocation6 + $0x100] sm:$0xff] }
  0x40   :  { %2776 = vmatprep.subr.bf16.mxu1 %v3297_v18  ;;  %v3306_v27 = vpack.c.bf16 %v102_v25, %v94_v24  ;;  %v3308_v31 = vpack.c.bf16 %v104_v29, %v96_v28  ;;  %v101_v32 = vld [vmem:[#allocation6 + $0x140] sm:$0xff]  ;;  %v95_v33 = vld [vmem:[#allocation6 + $0x110] sm:$0xff]  ;;  %v110_v36 = vld [vmem:[#allocation6 + $0x188] sm:$0xff]  ;;  %p3142_p13 = por %p3141_p12, %p3140_p11 }
  0x41   :  { %v103_v34 = vld [vmem:[#allocation6 + $0x150] sm:$0xff]  ;;  %v3311_v35 = vpack.c.bf16 %v101_v32, %v93_v30  ;;  %v118_v37 = vld [vmem:[#allocation6 + $0x1c8] sm:$0xff]  ;;  %v112_v38 = vld [vmem:[#allocation6 + $0x198] sm:$0xff] }
  0x42   :  { %2746 = vmatpush1.bf16.msra.mxu0 %v3300_v22  ;;  %2778 = vmatpush1.bf16.msra.mxu1 %v3304_v26  ;;  %v3315_v39 = vpack.c.bf16 %v103_v34, %v95_v33  ;;  %v3317_v40 = vpack.c.bf16 %v118_v37, %v110_v36  ;;  %v120_v41 = vld [vmem:[#allocation6 + $0x1d8] sm:$0xff]  ;;  %v109_v42 = vld [vmem:[#allocation6 + $0x180] sm:$0xff]  ;;  %v111_v45 = vld [vmem:[#allocation6 + $0x190] sm:$0xff]  ;;  %p3143_p0 = pnand %p3142_p13, %p3136_p10 }
  0x43   :  { %2748 = vmatprep.subr.bf16.mxu0 %v3306_v27  ;;  %v117_v43 = vld [vmem:[#allocation6 + $0x1c0] sm:$0xff]  ;;  %2780 = vmatprep.subr.bf16.mxu1 %v3308_v31  ;;  %v3320_v44 = vpack.c.bf16 %v120_v41, %v112_v38  ;;  %v119_v46 = vld [vmem:[#allocation6 + $0x1d0] sm:$0xff]  ;;  %v126_v47 = vld [vmem:[#allocation6 + $0x208] sm:$0xff] }
  0x44   :  { %v134_v48 = vld [vmem:[#allocation6 + $0x248] sm:$0xff]  ;;  %v128_v49 = vld [vmem:[#allocation6 + $0x218] sm:$0xff]  ;;  %v3323_v51 = vpack.c.bf16 %v117_v43, %v109_v42  ;;  %v3327_v52 = vpack.c.bf16 %v119_v46, %v111_v45  ;;  %v125_v54 = vld [vmem:[#allocation6 + $0x200] sm:$0xff] }
  0x45   :  { %v136_v50 = vld [vmem:[#allocation6 + $0x258] sm:$0xff]  ;;  %v3329_v53 = vpack.c.bf16 %v134_v48, %v126_v47  ;;  %v133_v55 = vld [vmem:[#allocation6 + $0x240] sm:$0xff]  ;;  %v127_v56 = vld [vmem:[#allocation6 + $0x210] sm:$0xff] }
  0x46   :  { %2750 = vmatpush1.bf16.msra.mxu0 %v3311_v35  ;;  %2782 = vmatpush1.bf16.msra.mxu1 %v3315_v39  ;;  %v3332_v57 = vpack.c.bf16 %v136_v50, %v128_v49  ;;  %v135_v58 = vld [vmem:[#allocation6 + $0x250] sm:$0xff]  ;;  %v142_v59 = vld [vmem:[#allocation6 + $0x288] sm:$0xff]  ;;  %v144_v61 = vld [vmem:[#allocation6 + $0x298] sm:$0xff]  ;;  %v3335_v63 = vpack.c.bf16 %v133_v55, %v125_v54 }
  0x47   :  { %2752 = vmatprep.subr.bf16.mxu0 %v3317_v40  ;;  %2784 = vmatprep.subr.bf16.mxu1 %v3320_v44  ;;  %v150_v60 = vld [vmem:[#allocation6 + $0x2c8] sm:$0xff]  ;;  %v152_v62 = vld [vmem:[#allocation6 + $0x2d8] sm:$0xff]  ;;  %v3339_v1 = vpack.c.bf16 %v135_v58, %v127_v56  ;;  %v141_v3 = vld [vmem:[#allocation6 + $0x280] sm:$0xff] }
  0x48   :  { %v3341_v2 = vpack.c.bf16 %v150_v60, %v142_v59  ;;  %v149_v5 = vld [vmem:[#allocation6 + $0x2c0] sm:$0xff]  ;;  %v143_v6 = vld [vmem:[#allocation6 + $0x290] sm:$0xff]  ;;  %v3344_v7 = vpack.c.bf16 %v152_v62, %v144_v61  ;;  %v158_v11 = vld [vmem:[#allocation6 + $0x308] sm:$0xff] }
  0x49   :  { %v151_v10 = vld [vmem:[#allocation6 + $0x2d0] sm:$0xff]  ;;  %v166_v12 = vld [vmem:[#allocation6 + $0x348] sm:$0xff]  ;;  %v160_v14 = vld [vmem:[#allocation6 + $0x318] sm:$0xff]  ;;  %v3347_v16 = vpack.c.bf16 %v149_v5, %v141_v3 }
  0x4a   :  { %2754 = vmatpush1.bf16.msra.mxu0 %v3323_v51  ;;  %2786 = vmatpush1.bf16.msra.mxu1 %v3327_v52  ;;  %4263 = vst [vmem:[#allocation16_spill] sm:$0xff] %v3344_v7  ;;  %v168_v15 = vld [vmem:[#allocation6 + $0x358] sm:$0xff]  ;;  %v3351_v19 = vpack.c.bf16 %v151_v10, %v143_v6  ;;  %v3353_v20 = vpack.c.bf16 %v166_v12, %v158_v11  ;;  %v157_v21 = vld [vmem:[#allocation6 + $0x300] sm:$0xff]  ;;  %v159_v24 = vld [vmem:[#allocation6 + $0x310] sm:$0xff] }
  0x4b   :  { %2756 = vmatprep.subr.bf16.mxu0 %v3329_v53  ;;  %2788 = vmatprep.subr.bf16.mxu1 %v3332_v57  ;;  %v165_v23 = vld [vmem:[#allocation6 + $0x340] sm:$0xff]  ;;  %v3356_v25 = vpack.c.bf16 %v168_v15, %v160_v14  ;;  %v167_v28 = vld [vmem:[#allocation6 + $0x350] sm:$0xff]  ;;  %v174_v29 = vld [vmem:[#allocation6 + $0x388] sm:$0xff] }
  0x4c   :  { %4264 = vst [vmem:[#allocation17_spill] sm:$0xff] %v3351_v19  ;;  %v182_v30 = vld [vmem:[#allocation6 + $0x3c8] sm:$0xff]  ;;  %v176_v32 = vld [vmem:[#allocation6 + $0x398] sm:$0xff]  ;;  %v3359_v34 = vpack.c.bf16 %v165_v23, %v157_v21  ;;  %v3363_v36 = vpack.c.bf16 %v167_v28, %v159_v24  ;;  %v173_v38 = vld [vmem:[#allocation6 + $0x380] sm:$0xff] }
  0x4d   :  { %4265 = vst [vmem:[#allocation18_spill] sm:$0xff] %v3356_v25  ;;  %v184_v33 = vld [vmem:[#allocation6 + $0x3d8] sm:$0xff]  ;;  %v3365_v37 = vpack.c.bf16 %v182_v30, %v174_v29  ;;  %v181_v41 = vld [vmem:[#allocation6 + $0x3c0] sm:$0xff]  ;;  %v175_v42 = vld [vmem:[#allocation6 + $0x390] sm:$0xff] }
  0x4e   :  { %2758 = vmatpush1.bf16.msra.mxu0 %v3335_v63  ;;  %2790 = vmatpush1.bf16.msra.mxu1 %v3339_v1  ;;  %4266 = vst [vmem:[#allocation19_spill] sm:$0xff] %v3363_v36  ;;  %v3368_v43 = vpack.c.bf16 %v184_v33, %v176_v32  ;;  %v183_v45 = vld [vmem:[#allocation6 + $0x3d0] sm:$0xff]  ;;  %v66_v46 = vld [vmem:[#allocation6 + $0x28] sm:$0xff]  ;;  %v68_v48 = vld [vmem:[#allocation6 + $0x38] sm:$0xff]  ;;  %v3371_v50 = vpack.c.bf16 %v181_v41, %v173_v38 }
  0x4f   :  { %2760 = vmatprep.subr.bf16.mxu0 %v3341_v2  ;;  %2792 = vmatprep.subr.bf16.mxu1 %v3344_v7  ;;  %v74_v47 = vld [vmem:[#allocation6 + $0x68] sm:$0xff]  ;;  %v76_v49 = vld [vmem:[#allocation6 + $0x78] sm:$0xff]  ;;  %v3375_v54 = vpack.c.bf16 %v183_v45, %v175_v42  ;;  %v65_v56 = vld [vmem:[#allocation6 + $0x20] sm:$0xff] }
  0x50   :  { %4267 = vst [vmem:[#allocation20_spill] sm:$0xff] %v3368_v43  ;;  %v3377_v55 = vpack.c.bf16 %v74_v47, %v66_v46  ;;  %v73_v58 = vld [vmem:[#allocation6 + $0x60] sm:$0xff]  ;;  %v67_v59 = vld [vmem:[#allocation6 + $0x30] sm:$0xff]  ;;  %v3380_v60 = vpack.c.bf16 %v76_v49, %v68_v48  ;;  %v82_v62 = vld [vmem:[#allocation6 + $0xa8] sm:$0xff] }
  0x51   :  { %4268 = vst [vmem:[#allocation21_spill] sm:$0xff] %v3375_v54  ;;  %v75_v61 = vld [vmem:[#allocation6 + $0x70] sm:$0xff]  ;;  %v90_v3 = vld [vmem:[#allocation6 + $0xe8] sm:$0xff]  ;;  %v84_v5 = vld [vmem:[#allocation6 + $0xb8] sm:$0xff]  ;;  %v3385_v11 = vpack.c.bf16 %v73_v58, %v65_v56 }
  0x52   :  { %2762 = vmatpush1.bf16.msra.mxu0 %v3347_v16  ;;  %2794 = vmatpush1.bf16.msra.mxu1 %v3351_v19  ;;  %4269 = vst [vmem:[#allocation22_spill] sm:$0xff] %v3380_v60  ;;  %v92_v6 = vld [vmem:[#allocation6 + $0xf8] sm:$0xff]  ;;  %v3389_v12 = vpack.c.bf16 %v75_v61, %v67_v59  ;;  %v3391_v14 = vpack.c.bf16 %v90_v3, %v82_v62  ;;  %v81_v15 = vld [vmem:[#allocation6 + $0xa0] sm:$0xff]  ;;  %v83_v23 = vld [vmem:[#allocation6 + $0xb0] sm:$0xff] }
  0x53   :  { %2764 = vmatprep.subr.bf16.mxu0 %v3353_v20  ;;  %2796 = vmatprep.subr.bf16.mxu1 %v3356_v25  ;;  %v3383_v10 = vld [vmem:[#allocation3] sm:$0x3]  ;;  %v89_v21 = vld [vmem:[#allocation6 + $0xe0] sm:$0xff]  ;;  %v3394_v24 = vpack.c.bf16 %v92_v6, %v84_v5  ;;  %v91_v28 = vld [vmem:[#allocation6 + $0xf0] sm:$0xff] }
  0x54   :  { %4270 = vst [vmem:[#allocation23_spill] sm:$0xff] %v3389_v12  ;;  %v98_v29 = vld [vmem:[#allocation6 + $0x128] sm:$0xff]  ;;  %v100_v32 = vld [vmem:[#allocation6 + $0x138] sm:$0xff]  ;;  %v3399_v38 = vpack.c.bf16 %v89_v21, %v81_v15  ;;  %v3403_v41 = vpack.c.bf16 %v91_v28, %v83_v23  ;;  %v97_v45 = vld [vmem:[#allocation6 + $0x120] sm:$0xff] }
  0x55   :  { %4271 = vst [vmem:[#allocation24_spill] sm:$0xff] %v3394_v24  ;;  %v106_v30 = vld [vmem:[#allocation6 + $0x168] sm:$0xff]  ;;  %v108_v33 = vld [vmem:[#allocation6 + $0x178] sm:$0xff]  ;;  %v105_v46 = vld [vmem:[#allocation6 + $0x160] sm:$0xff] }
  0x56   :  { %2766 = vmatpush1.bf16.msra.mxu0 %v3359_v34  ;;  %2798 = vmatpush1.bf16.msra.mxu1 %v3363_v36  ;;  %4272 = vst [vmem:[#allocation25_spill] sm:$0xff] %v3403_v41  ;;  %v3405_v42 = vpack.c.bf16 %v106_v30, %v98_v29  ;;  %v99_v47 = vld [vmem:[#allocation6 + $0x130] sm:$0xff]  ;;  %v3408_v48 = vpack.c.bf16 %v108_v33, %v100_v32  ;;  %v114_v56 = vld [vmem:[#allocation6 + $0x1a8] sm:$0xff]  ;;  %v116_v59 = vld [vmem:[#allocation6 + $0x1b8] sm:$0xff] }
  0x57   :  { %2768 = vmatprep.subr.bf16.mxu0 %v3365_v37  ;;  %2800 = vmatprep.subr.bf16.mxu1 %v3368_v43  ;;  %v107_v49 = vld [vmem:[#allocation6 + $0x170] sm:$0xff]  ;;  %v122_v58 = vld [vmem:[#allocation6 + $0x1e8] sm:$0xff]  ;;  %v124_v61 = vld [vmem:[#allocation6 + $0x1f8] sm:$0xff]  ;;  %v3413_v62 = vpack.c.bf16 %v105_v46, %v97_v45 }
  0x58   :  { %4273 = vst [vmem:[#allocation26_spill] sm:$0xff] %v3408_v48  ;;  %v3417_v3 = vpack.c.bf16 %v107_v49, %v99_v47  ;;  %v3419_v5 = vpack.c.bf16 %v122_v58, %v114_v56  ;;  %v113_v6 = vld [vmem:[#allocation6 + $0x1a0] sm:$0xff]  ;;  %v115_v21 = vld [vmem:[#allocation6 + $0x1b0] sm:$0xff]  ;;  %v3422_v23 = vpack.c.bf16 %v124_v61, %v116_v59  ;;  %v130_v29 = vld [vmem:[#allocation6 + $0x228] sm:$0xff] }
  0x59   :  { %v121_v15 = vld [vmem:[#allocation6 + $0x1e0] sm:$0xff]  ;;  %v123_v28 = vld [vmem:[#allocation6 + $0x1f0] sm:$0xff]  ;;  %v138_v30 = vld [vmem:[#allocation6 + $0x268] sm:$0xff] }
  0x5a   :  { %2770 = vmatpush1.bf16.msra.mxu0 %v3371_v50  ;;  %2802 = vmatpush1.bf16.msra.mxu1 %v3375_v54  ;;  %4274 = vst [vmem:[#allocation27_spill] sm:$0xff] %v3417_v3  ;;  %4275 = vst [vmem:[#allocation28_spill] sm:$0xff] %v3422_v23  ;;  %v132_v32 = vld [vmem:[#allocation6 + $0x238] sm:$0xff]  ;;  %v3425_v45 = vpack.c.bf16 %v121_v15, %v113_v6  ;;  %v3429_v46 = vpack.c.bf16 %v123_v28, %v115_v21  ;;  %v129_v49 = vld [vmem:[#allocation6 + $0x220] sm:$0xff] }
  0x5b   :  { %2804 = vmatprep.subr.bf16.mxu0 %v3377_v55  ;;  %2836 = vmatprep.subr.bf16.mxu1 %v3380_v60  ;;  %v140_v33 = vld [vmem:[#allocation6 + $0x278] sm:$0xff]  ;;  %v3431_v47 = vpack.c.bf16 %v138_v30, %v130_v29  ;;  %v137_v56 = vld [vmem:[#allocation6 + $0x260] sm:$0xff]  ;;  %v131_v58 = vld [vmem:[#allocation6 + $0x230] sm:$0xff] }
  0x5c   :  { %4276 = vst [vmem:[#allocation29_spill] sm:$0xff] %v3429_v46  ;;  %v3434_v59 = vpack.c.bf16 %v140_v33, %v132_v32  ;;  %v139_v61 = vld [vmem:[#allocation6 + $0x270] sm:$0xff]  ;;  %v148_v6 = vld [vmem:[#allocation6 + $0x2b8] sm:$0xff]  ;;  %v145_v29 = vld [vmem:[#allocation6 + $0x2a0] sm:$0xff] }
  0x5d   :  { %270 = vmatmul.mubr.f32.vlgmr.msra.gmra.mrb[0].mxu0 %v3383_v10  ;;  %341 = vmatmul.mubr.f32.vlgmr.msra.gmra.mrb[0].mxu1 %v3383_v10  ;;  %v156_v15 = vld [vmem:[#allocation6 + $0x2f8] sm:$0xff]  ;;  %v3441_v21 = vpack.c.bf16 %v139_v61, %v131_v58  ;;  %v153_v30 = vld [vmem:[#allocation6 + $0x2e0] sm:$0xff]  ;;  %v147_v32 = vld [vmem:[#allocation6 + $0x2b0] sm:$0xff] }
  0x5e   :  { %2806 = vmatpush1.bf16.msra.mxu0 %v3385_v11  ;;  %2838 = vmatpush1.bf16.msra.mxu1 %v3389_v12  ;;  %4277 = vst [vmem:[#allocation30_spill] sm:$0xff] %v3434_v59  ;;  %v3446_v33 = vpack.c.bf16 %v156_v15, %v148_v6  ;;  %v161_v58 = vld [vmem:[#allocation6 + $0x320] sm:$0xff]  ;;  %v163_v6 = vld [vmem:[#allocation6 + $0x330] sm:$0xff]  ;;  %v178_v12 = vld [vmem:[#allocation6 + $0x3a8] sm:$0xff] }
  0x5f   :  { %2808 = vmatprep.subr.bf16.mxu0 %v3391_v14  ;;  %2840 = vmatprep.subr.bf16.mxu1 %v3394_v24  ;;  %4279 = vst [vmem:[#allocation32_spill] sm:$0xff] %v3441_v21  ;;  %v170_v24 = vld [vmem:[#allocation6 + $0x368] sm:$0xff]  ;;  %v169_v61 = vld [vmem:[#allocation6 + $0x360] sm:$0xff] }
  0x60   :  { %411 = vmatprep.mubr.f32.mxu0 %v4208_v0  ;;  %482 = vmatprep.mubr.f32.mxu1 %v4208_v0  ;;  %v146_v0 = vld [vmem:[#allocation6 + $0x2a8] sm:$0xff]  ;;  %4281 = vst [vmem:[#allocation34_spill] sm:$0xff] %v3446_v33 }
  0x61   :  { %v186_v60 = vld [vmem:[#allocation6 + $0x3e8] sm:$0xff] }
  0x62   :  { %2810 = vmatpush1.bf16.msra.mxu0 %v3399_v38  ;;  %2842 = vmatpush1.bf16.msra.mxu1 %v3403_v41  ;;  %v162_v41 = vld [vmem:[#allocation6 + $0x328] sm:$0xff] }
  0x63   :  { %2812 = vmatprep.subr.bf16.mxu0 %v3405_v42  ;;  %2844 = vmatprep.subr.bf16.mxu1 %v3408_v48  ;;  %v154_v48 = vld [vmem:[#allocation6 + $0x2e8] sm:$0xff] }
  0x64   :  { %v3443_v28 = vpack.c.bf16 %v154_v48, %v146_v0  ;;  %v3455_v48 = vpack.c.bf16 %v170_v24, %v162_v41  ;;  %v3467_v41 = vpack.c.bf16 %v186_v60, %v178_v12  ;;  %v4292_v60 = vmov 0.0  }
  0x65   :  { %v3196_v12 = vmov 1983009808  }
  0x66   :  { %2814 = vmatpush1.bf16.msra.mxu0 %v3413_v62  ;;  %2846 = vmatpush1.bf16.msra.mxu1 %v3417_v3  ;;  %v3437_v3 = vpack.c.bf16 %v137_v56, %v129_v49  ;;  %4280 = vst [vmem:[#allocation33_spill] sm:$0xff] %v3443_v28  ;;  %v164_v49 = vld [vmem:[#allocation6 + $0x338] sm:$0xff]  ;;  %4284 = vst [vmem:[#allocation37_spill] sm:$0xff] %v3455_v48 }
  0x67   :  { %2816 = vmatprep.subr.bf16.mxu0 %v3419_v5  ;;  %2848 = vmatprep.subr.bf16.mxu1 %v3422_v23  ;;  %v155_v23 = vld [vmem:[#allocation6 + $0x2f0] sm:$0xff]  ;;  %v172_v56 = vld [vmem:[#allocation6 + $0x378] sm:$0xff]  ;;  %4288 = vst [vmem:[#allocation41_spill] sm:$0xff] %v3467_v41 }
  0x68   :  { %4278 = vst [vmem:[#allocation31_spill] sm:$0xff] %v3437_v3  ;;  %v3453_v0 = vpack.c.bf16 %v155_v23, %v147_v32  ;;  %v3458_v15 = vpack.c.bf16 %v172_v56, %v164_v49  ;;  %v177_v23 = vld [vmem:[#allocation6 + $0x3a0] sm:$0xff]  ;;  %v179_v56 = vld [vmem:[#allocation6 + $0x3b0] sm:$0xff] }
  0x69   :  { %v185_v32 = vld [vmem:[#allocation6 + $0x3e0] sm:$0xff] }
  0x6a   :  { %2818 = vmatpush1.bf16.msra.mxu0 %v3425_v45  ;;  %2850 = vmatpush1.bf16.msra.mxu1 %v3429_v46  ;;  %v3449_v46 = vpack.c.bf16 %v153_v30, %v145_v29  ;;  %4283 = vst [vmem:[#allocation36_spill] sm:$0xff] %v3453_v0  ;;  %4285 = vst [vmem:[#allocation38_spill] sm:$0xff] %v3458_v15  ;;  %v180_v29 = vld [vmem:[#allocation6 + $0x3b8] sm:$0xff] }
  0x6b   :  { %2820 = vmatprep.subr.bf16.mxu0 %v3431_v47  ;;  %2852 = vmatprep.subr.bf16.mxu1 %v3434_v59  ;;  %v171_v59 = vld [vmem:[#allocation6 + $0x370] sm:$0xff]  ;;  %v188_v30 = vld [vmem:[#allocation6 + $0x3f8] sm:$0xff] }
  0x6c   :  { %4282 = vst [vmem:[#allocation35_spill] sm:$0xff] %v3449_v46  ;;  %v3465_v24 = vpack.c.bf16 %v171_v59, %v163_v6  ;;  %v3470_v49 = vpack.c.bf16 %v188_v30, %v180_v29 }
  0x6e   :  { %2822 = vmatpush1.bf16.msra.mxu0 %v3437_v3  ;;  %2854 = vmatpush1.bf16.msra.mxu1 %v3441_v21  ;;  %v3461_v21 = vpack.c.bf16 %v169_v61, %v161_v58  ;;  %4287 = vst [vmem:[#allocation40_spill] sm:$0xff] %v3465_v24  ;;  %4289 = vst [vmem:[#allocation42_spill] sm:$0xff] %v3470_v49  ;;  %v3473_v58 = vpack.c.bf16 %v185_v32, %v177_v23  ;;  %v4244_v61 = vlaneseq }
  0x6f   :  { %2824 = vmatprep.subr.bf16.mxu0 %v3443_v28  ;;  %2856 = vmatprep.subr.bf16.mxu1 %v3446_v33  ;;  %v187_v33 = vld [vmem:[#allocation6 + $0x3f0] sm:$0xff] }
  0x70   :  { %4286 = vst [vmem:[#allocation39_spill] sm:$0xff] %v3461_v21  ;;  %4290 = vst [vmem:[#allocation43_spill] sm:$0xff] %v3473_v58  ;;  %v3477_v59 = vpack.c.bf16 %v187_v33, %v179_v56  ;;  %v531_v33 = vunpack.c.l.s4 %v3196_v12  ;;  %v3491_v29 = vshrl.u32 %v4244_v61, 7  ;;  %v3197_v12 = vmov 1934713408  }
  0x72   :  { %2826 = vmatpush1.bf16.msra.mxu0 %v3449_v46  ;;  %2858 = vmatpush1.bf16.msra.mxu1 %v3453_v0  ;;  %4291 = vst [vmem:[#allocation44_spill] sm:$0xff] %v3477_v59  ;;  %v532_v6 = vunpack.c.0.s8 %v531_v33  ;;  %4293 = vst [vmem:[#allocation45_spill] sm:$0xff] %v3491_v29 }
  0x73   :  { %2828 = vmatprep.subr.bf16.mxu0 %v3455_v48  ;;  %2860 = vmatprep.subr.bf16.mxu1 %v3458_v15 }
  0x74   :  { %v3494_v23 = vsub.s32 %v532_v6, %v3491_v29 }
  0x76   :  { %2830 = vmatpush1.bf16.msra.mxu0 %v3461_v21  ;;  %2862 = vmatpush1.bf16.msra.mxu1 %v3465_v24 }
  0x77   :  { %2832 = vmatprep.subr.bf16.mxu0 %v3467_v41  ;;  %2864 = vmatprep.subr.bf16.mxu1 %v3470_v49 }
  0x7a   :  { %2834 = vmatpush1.bf16.msra.mxu0 %v3473_v58  ;;  %2866 = vmatpush1.bf16.msra.mxu1 %v3477_v59  ;;  %v547_v58 = vunpack.c.l.s4 %v3197_v12 }
  0x7b   :  { %2661 = vmatprep.subr.mxu0 %v4292_v60  ;;  %2666 = vmatprep.subr.mxu1 %v4292_v60 }
  0x7c   :  { %v548_v3 = vunpack.c.0.s8 %v547_v58 }
  0x7d   :  { %412 = vmatmul.mubr.f32.vlgmr.msra.gmra.mrb[2].mxu0 %v3383_v10  ;;  %483 = vmatmul.mubr.f32.vlgmr.msra.gmra.mrb[2].mxu1 %v3383_v10 }
  0x7e   :  { %2663 = vmatprep.mubr.msk.f32.mxu0 %vm3195_vm0, %v4292_v60  ;;  %2668 = vmatprep.mubr.msk.f32.mxu1 %vm3195_vm0, %v4292_v60 }
 0x130   :  { %v271_v30 = vpop.f32.mrb[0].mxu0  ;;  %v342_v32 = vpop.f32.mrb[0].mxu1 }
 0x131   :  { %v273_v10 = vpop.f32.mrb[1].mxu0  ;;  %v529_v56 = vcombine.low %v271_v30, %v342_v32  ;;  %v344_v59 = vpop.f32.mrb[1].mxu1  ;;  %v489_v54 = vmul.f32 %v271_v30, %v271_v30  ;;  %v491_v61 = vmul.f32 %v342_v32, %v342_v32  ;;  %v3500_v30 = vsub.s32 %v548_v3, %v3491_v29 }
 0x132   :  { %v537_v49 = vcombine.low %v273_v10, %v344_v59  ;;  %v490_v6 = vmul.f32 %v273_v10, %v273_v10 }
 0x133   :  { %v536_v24 = vrot.slane %v529_v56, %v3494_v23 }
 0x134   :  { %v544_v15 = vrot.slane %v537_v49, %v3494_v23 }
 0x136   :  { %v545_v0 = vcombine.low %v536_v24, %v544_v15  ;;  %v492_v15 = vmul.f32 %v344_v59, %v344_v59 }
 0x150   :  { %v413_v33 = vpop.f32.mrb[2].mxu0  ;;  %v484_v21 = vpop.f32.mrb[2].mxu1 }
 0x151   :  { %v493_v41 = vmul.f32 %v413_v33, %v413_v33  ;;  %v415_v43 = vpop.f32.mrb[3].mxu0  ;;  %v495_v36 = vmul.f32 %v484_v21, %v484_v21  ;;  %v554_v48 = vcombine.low %v413_v33, %v484_v21  ;;  %v486_v25 = vpop.f32.mrb[3].mxu1 }
 0x152   :  { %v494_v46 = vmul.f32 %v415_v43, %v415_v43  ;;  %v562_v28 = vcombine.low %v415_v43, %v486_v25  ;;  %v496_v49 = vmul.f32 %v486_v25, %v486_v25  ;;  %v3504_v43 = vrot.slane %v545_v0, %v3500_v30 }
 0x153   :  { %v497_v19 = vadd.f32 %v493_v41, %v489_v54  ;;  %v499_v56 = vadd.f32 %v495_v36, %v491_v61  ;;  %v561_v24 = vrot.slane %v554_v48, %v3494_v23 }
 0x154   :  { %v498_v7 = vadd.f32 %v494_v46, %v490_v6  ;;  %v500_v32 = vadd.f32 %v496_v49, %v492_v15  ;;  %v569_v21 = vrot.slane %v562_v28, %v3494_v23  ;;  %v3511_v3 = vcombine.high %v3504_v43, %v4292_v60 }
 0x155   :  { %3061 = vrsqrt.f32 %v497_v19  ;;  %vm503_vm1 = vcmp.eq.f32.partialorder %v497_v19, inf  ;;  %vm505_vm2 = vcmp.eq.f32.partialorder %v497_v19, 0.0  ;;  %v506_v41 = vand.u32 2147483648, %v497_v19 }
 0x156   :  { %3063 = vrsqrt.f32 %v499_v56  ;;  %v570_v10 = vcombine.low %v561_v24, %v569_v21  ;;  %vm517_vm3 = vcmp.eq.f32.partialorder %v499_v56, inf  ;;  %vm519_vm4 = vcmp.eq.f32.partialorder %v499_v56, 0.0 }
 0x157   :  { %3065 = vrsqrt.f32 %v498_v7  ;;  %v520_v59 = vand.u32 2147483648, %v499_v56  ;;  %vm510_vm5 = vcmp.eq.f32.partialorder %v498_v7, inf  ;;  %v513_v6 = vand.u32 2147483648, %v498_v7 }
 0x158   :  { %3067 = vrsqrt.f32 %v500_v32  ;;  %v577_v36 = vrot.slane %v570_v10, %v3500_v30  ;;  %vm512_vm6 = vcmp.eq.f32.partialorder %v498_v7, 0.0  ;;  %v190_v10 = vld [vmem:[#allocation8 + $0x8] sm:$0xff]  ;;  %vm524_vm7 = vcmp.eq.f32.partialorder %v500_v32, inf }
 0x159   :  { %vm526_vm8 = vcmp.eq.f32.partialorder %v500_v32, 0.0 }
 0x15a   :  { %2662 = vmatpush3.xpose.msra.mxu0 %v577_v36  ;;  %v578_v54 = vcombine.high %v577_v36, %v4292_v60 }
 0x15b   :  { %2671 = vmatprep.subr.mxu0 %v4292_v60 }
 0x15c   :  { %2667 = vmatpush3.xpose.msra.mxu1 %v578_v54 }
 0x15d   :  { %2664 = vmatmul.mubr.f32.vlgmr.msra.gmra.mrb[4].mxu0 %v577_v36  ;;  %2676 = vmatprep.subr.mxu1 %v4292_v60 }
 0x15e   :  { %2672 = vmatpush3.xpose.msra.mxu0 %v3504_v43  ;;  %2673 = vmatprep.mubr.msk.f32.mxu0 %vm3195_vm0, %v4292_v60 }
 0x15f   :  { %v3062_v25 = vpop.eup %3061  ;;  %2669 = vmatmul.mubr.f32.vlgmr.msra.gmra.mrb[4].mxu1 %v578_v54  ;;  %2681 = vmatprep.subr.mxu0 %v4292_v60 }
 0x160   :  { %v3064_v46 = vpop.eup %3063  ;;  %v502_v48 = vmul.f32 %v3062_v25, %v497_v19  ;;  %2677 = vmatpush3.xpose.msra.mxu1 %v3511_v3  ;;  %2678 = vmatprep.mubr.msk.f32.mxu1 %vm3195_vm0, %v4292_v60  ;;  %v527_v25 = vand.u32 2147483648, %v500_v32 }
 0x161   :  { %v3066_v28 = vpop.eup %3065  ;;  %v516_v0 = vmul.f32 %v3064_v46, %v499_v56  ;;  %2674 = vmatmul.mubr.f32.vlgmr.msra.gmra.mrb[6].mxu0 %v577_v36  ;;  %2686 = vmatprep.subr.mxu1 %v4292_v60 }
 0x162   :  { %v504_v58 = vsel %vm503_vm1, %v497_v19, %v502_v48  ;;  %v509_v61 = vmul.f32 %v3066_v28, %v498_v7  ;;  %v3068_v49 = vpop.eup %3067  ;;  %2682 = vmatpush3.xpose.msra.mxu0 %v577_v36  ;;  %2683 = vmatprep.mubr.msk.f32.mxu0 %vm3195_vm0, %v4292_v60  ;;  %v191_v28 = vld [vmem:[#allocation8 + $0x10] sm:$0xff] }
 0x163   :  { %v507_v12 = vsel %vm505_vm2, %v506_v41, %v504_v58  ;;  %v518_v33 = vsel %vm517_vm3, %v499_v56, %v516_v0  ;;  %v523_v21 = vmul.f32 %v3068_v49, %v500_v32  ;;  %v189_v56 = vld [vmem:[#allocation8] sm:$0xff]  ;;  %2679 = vmatmul.mubr.f32.vlgmr.msra.gmra.mrb[6].mxu1 %v578_v54  ;;  %2691 = vmatprep.subr.mxu0 %v4292_v60  ;;  %v192_v41 = vld [vmem:[#allocation8 + $0x18] sm:$0xff]  ;;  %v194_v0 = vld [vmem:[#allocation8 + $0x28] sm:$0xff] }
 0x164   :  { %1154 = vst [vmem:[#allocation2] sm:$0x3] %v507_v12  ;;  %v521_v15 = vsel %vm519_vm4, %v520_v59, %v518_v33  ;;  %v511_v24 = vsel %vm510_vm5, %v498_v7, %v509_v61  ;;  %v2867_v48 = vpack.c.bf16 %v190_v10, %v189_v56  ;;  %2687 = vmatpush3.xpose.msra.mxu1 %v578_v54  ;;  %v193_v54 = vld [vmem:[#allocation8 + $0x20] sm:$0xff]  ;;  %v195_v59 = vld [vmem:[#allocation8 + $0x30] sm:$0xff]  ;;  %v196_v61 = vld [vmem:[#allocation8 + $0x38] sm:$0xff] }
 0x165   :  { %1156 = vst [vmem:[#allocation2 + $0x10] sm:$0x3] %v521_v15  ;;  %v514_v19 = vsel %vm512_vm6, %v513_v6, %v511_v24  ;;  %v525_v7 = vsel %vm524_vm7, %v500_v32, %v523_v21  ;;  %2688 = vmatprep.mubr.msk.f32.mxu1 %vm3195_vm0, %v4292_v60  ;;  %2684 = vmatmul.mubr.f32.vlgmr.msra.gmra.mrb[8].mxu0 %v3504_v43  ;;  %v198_v12 = vld [vmem:[#allocation8 + $0x48] sm:$0xff]  ;;  %v200_v33 = vld [vmem:[#allocation8 + $0x58] sm:$0xff]  ;;  %v201_v6 = vld [vmem:[#allocation8 + $0x60] sm:$0xff] }
 0x166   :  { %1155 = vst [vmem:[#allocation2 + $0x8] sm:$0x3] %v514_v19  ;;  %v528_v46 = vsel %vm526_vm8, %v527_v25, %v525_v7  ;;  %2696 = vmatprep.subr.mxu1 %v4292_v60  ;;  %2692 = vmatpush3.xpose.msra.mxu0 %v3504_v43  ;;  %v2871_v36 = vpack.c.bf16 %v192_v41, %v191_v28  ;;  %v203_v49 = vld [vmem:[#allocation8 + $0x70] sm:$0xff]  ;;  %v4319_v15 = vld [vmem:[#allocation38_spill] sm:$0xff] }
 0x167   :  { %1157 = vst [vmem:[#allocation2 + $0x18] sm:$0x3] %v528_v46  ;;  %2693 = vmatprep.mubr.msk.f32.mxu0 %vm3195_vm0, %v4292_v60  ;;  %2689 = vmatmul.mubr.f32.vlgmr.msra.gmra.mrb[8].mxu1 %v3511_v3  ;;  %v2875_v58 = vpack.c.bf16 %v194_v0, %v193_v54  ;;  %v4320_v24 = vld [vmem:[#allocation40_spill] sm:$0xff]  ;;  %v4321_v19 = vld [vmem:[#allocation42_spill] sm:$0xff] }
 0x168   :  { %2868 = vmatprep.subr.bf16.mxu0 %v2867_v48  ;;  %2697 = vmatpush3.xpose.msra.mxu1 %v3511_v3  ;;  %v4322_v21 = vld [vmem:[#allocation44_spill] sm:$0xff] }
 0x169   :  { %2698 = vmatprep.mubr.msk.f32.mxu1 %vm3195_vm0, %v4292_v60  ;;  %2694 = vmatmul.mubr.f32.vlgmr.msra.gmra.mrb[4].mxu0 %v3504_v43  ;;  %v2879_v43 = vpack.c.bf16 %v196_v61, %v195_v59 }
 0x16a   :  { %2900 = vmatprep.subr.bf16.mxu1 %v3284_v4  ;;  %2870 = vmatpush3.bf16.msra.mxu0 %v2867_v48  ;;  %v197_v4 = vld [vmem:[#allocation8 + $0x40] sm:$0xff] }
 0x16b   :  { %v3533_v32 = vld [vmem:[#allocation2] sm:$0xff]  ;;  %2699 = vmatmul.mubr.f32.vlgmr.msra.gmra.mrb[4].mxu1 %v3511_v3  ;;  %2872 = vmatprep.subr.bf16.mxu0 %v2871_v36  ;;  %v2883_v3 = vpack.c.bf16 %v198_v12, %v197_v4 }
 0x16c   :  { %2733 = vmatprep.mubr.f32.mxu0 %v3533_v32  ;;  %2902 = vmatpush1.bf16.msra.mxu1 %v3288_v9  ;;  %v199_v9 = vld [vmem:[#allocation8 + $0x50] sm:$0xff] }
 0x16d   :  { %1344 = vmatprep.mubr.f32.mxu1 %v4292_v60  ;;  %2904 = vmatprep.subr.bf16.mxu1 %v3295_v17  ;;  %v2887_v17 = vpack.c.bf16 %v200_v33, %v199_v9 }
 0x16e   :  { %2874 = vmatpush3.bf16.msra.mxu0 %v2871_v36 }
 0x16f   :  { %2876 = vmatprep.subr.bf16.mxu0 %v2875_v58 }
 0x170   :  { %2906 = vmatpush1.bf16.msra.mxu1 %v3300_v22  ;;  %v202_v22 = vld [vmem:[#allocation8 + $0x68] sm:$0xff] }
 0x171   :  { %2908 = vmatprep.subr.bf16.mxu1 %v3306_v27  ;;  %v2891_v27 = vpack.c.bf16 %v202_v22, %v201_v6 }
 0x172   :  { %2878 = vmatpush3.bf16.msra.mxu0 %v2875_v58 }
 0x173   :  { %2880 = vmatprep.subr.bf16.mxu0 %v2879_v43 }
 0x174   :  { %2910 = vmatpush1.bf16.msra.mxu1 %v3311_v35  ;;  %v204_v35 = vld [vmem:[#allocation8 + $0x78] sm:$0xff] }
 0x175   :  { %2912 = vmatprep.subr.bf16.mxu1 %v3317_v40  ;;  %v2895_v40 = vpack.c.bf16 %v204_v35, %v203_v49 }
 0x176   :  { %2882 = vmatpush3.bf16.msra.mxu0 %v2879_v43 }
 0x177   :  { %2884 = vmatprep.subr.bf16.mxu0 %v2883_v3 }
 0x178   :  { %2914 = vmatpush1.bf16.msra.mxu1 %v3323_v51  ;;  %v3559_v51 = vld [vmem:[#allocation2 + $0x8] sm:$0xff] }
 0x179   :  { %2916 = vmatprep.subr.bf16.mxu1 %v3329_v53  ;;  %v3562_v53 = vld [vmem:[#allocation2 + $0x10] sm:$0xff] }
 0x17a   :  { %2886 = vmatpush3.bf16.msra.mxu0 %v2883_v3 }
 0x17b   :  { %2888 = vmatprep.subr.bf16.mxu0 %v2887_v17 }
 0x17c   :  { %2918 = vmatpush1.bf16.msra.mxu1 %v3335_v63  ;;  %v4302_v63 = vld [vmem:[#allocation20_spill] sm:$0xff] }
 0x17d   :  { %2920 = vmatprep.subr.bf16.mxu1 %v3341_v2  ;;  %v4303_v2 = vld [vmem:[#allocation39_spill] sm:$0xff] }
 0x17e   :  { %2890 = vmatpush3.bf16.msra.mxu0 %v2887_v17 }
 0x17f   :  { %2892 = vmatprep.subr.bf16.mxu0 %v2891_v27 }
 0x180   :  { %2922 = vmatpush1.bf16.msra.mxu1 %v3347_v16  ;;  %v4305_v16 = vld [vmem:[#allocation21_spill] sm:$0xff] }
 0x181   :  { %2924 = vmatprep.subr.bf16.mxu1 %v3353_v20  ;;  %v4306_v20 = vld [vmem:[#allocation22_spill] sm:$0xff] }
 0x182   :  { %2894 = vmatpush3.bf16.msra.mxu0 %v2891_v27 }
 0x183   :  { %2896 = vmatprep.subr.bf16.mxu0 %v2895_v40 }
 0x184   :  { %2926 = vmatpush1.bf16.msra.mxu1 %v3359_v34  ;;  %v4307_v34 = vld [vmem:[#allocation43_spill] sm:$0xff] }
 0x185   :  { %2928 = vmatprep.subr.bf16.mxu1 %v3365_v37  ;;  %v4308_v37 = vld [vmem:[#allocation23_spill] sm:$0xff] }
 0x186   :  { %2898 = vmatpush3.bf16.msra.mxu0 %v2895_v40 }
 0x187   :  { %2932 = vmatprep.subr.bf16.mxu0 %v3286_v8  ;;  %v3570_v8 = vld [vmem:[#allocation2 + $0x18] sm:$0xff] }
 0x188   :  { %2930 = vmatpush1.bf16.msra.mxu1 %v3371_v50  ;;  %v4309_v50 = vld [vmem:[#allocation24_spill] sm:$0xff] }
 0x189   :  { %2734 = vmatmul.mubr.f32.vlgmr.msra.gmra.mrb[10].mxu0 %v3559_v51  ;;  %2964 = vmatprep.subr.bf16.mxu1 %v3377_v55  ;;  %v4310_v55 = vld [vmem:[#allocation25_spill] sm:$0xff] }
 0x18a   :  { %2736 = vmatprep.mubr.f32.mxu0 %v3562_v53  ;;  %2934 = vmatpush1.bf16.msra.mxu0 %v3291_v13  ;;  %v4294_v13 = vld [vmem:[#allocation16_spill] sm:$0xff] }
 0x18b   :  { %1345 = vmatmul.mubr.f32.vlgmr.msra.gmra.mrb[10].mxu1 %v3533_v32  ;;  %2936 = vmatprep.subr.bf16.mxu0 %v3297_v18  ;;  %v4295_v18 = vld [vmem:[#allocation31_spill] sm:$0xff] }
 0x18c   :  { %2966 = vmatpush1.bf16.msra.mxu1 %v3385_v11  ;;  %1350 = vmatprep.mubr.f32.mxu1 %v4292_v60  ;;  %v4311_v11 = vld [vmem:[#allocation26_spill] sm:$0xff] }
 0x18d   :  { %2737 = vmatmul.mubr.f32.gmra.mrb[12].mxu0 %v3570_v8  ;;  %2968 = vmatprep.subr.bf16.mxu1 %v3391_v14  ;;  %v4312_v14 = vld [vmem:[#allocation27_spill] sm:$0xff] }
 0x18e   :  { %2938 = vmatpush1.bf16.msra.mxu0 %v3304_v26  ;;  %1433 = vmatprep.mubr.f32.mxu0 %v4292_v60  ;;  %v4296_v26 = vld [vmem:[#allocation33_spill] sm:$0xff] }
 0x18f   :  { %1351 = vmatmul.mubr.f32.gmra.mrb[12].mxu1 %v3559_v51  ;;  %2940 = vmatprep.subr.bf16.mxu0 %v3308_v31  ;;  %v4297_v31 = vld [vmem:[#allocation17_spill] sm:$0xff] }
 0x190   :  { %2970 = vmatpush1.bf16.msra.mxu1 %v3399_v38  ;;  %1356 = vmatprep.mubr.f32.mxu1 %v4292_v60  ;;  %v4313_v38 = vld [vmem:[#allocation28_spill] sm:$0xff] }
 0x191   :  { %2972 = vmatprep.subr.bf16.mxu1 %v3405_v42  ;;  %v4314_v42 = vld [vmem:[#allocation29_spill] sm:$0xff] }
 0x192   :  { %2942 = vmatpush1.bf16.msra.mxu0 %v3315_v39  ;;  %v4298_v39 = vld [vmem:[#allocation18_spill] sm:$0xff] }
 0x193   :  { %1357 = vmatmul.mubr.f32.gmra.mrb[14].mxu1 %v3562_v53  ;;  %2944 = vmatprep.subr.bf16.mxu0 %v3320_v44  ;;  %v4299_v44 = vld [vmem:[#allocation35_spill] sm:$0xff] }
 0x194   :  { %2974 = vmatpush1.bf16.msra.mxu1 %v3413_v62  ;;  %1362 = vmatprep.mubr.f32.mxu1 %v4292_v60  ;;  %v4315_v62 = vld [vmem:[#allocation30_spill] sm:$0xff] }
 0x195   :  { %2976 = vmatprep.subr.bf16.mxu1 %v3419_v5  ;;  %v4316_v5 = vld [vmem:[#allocation32_spill] sm:$0xff] }
 0x196   :  { %2946 = vmatpush1.bf16.msra.mxu0 %v3327_v52  ;;  %v4300_v52 = vld [vmem:[#allocation37_spill] sm:$0xff] }
 0x197   :  { %1363 = vmatmul.mubr.f32.gmra.mrb[16].mxu1 %v3570_v8  ;;  %2948 = vmatprep.subr.bf16.mxu0 %v3332_v57  ;;  %v4301_v57 = vld [vmem:[#allocation19_spill] sm:$0xff] }
 0x198   :  { %2978 = vmatpush1.bf16.msra.mxu1 %v3425_v45  ;;  %1522 = vmatprep.mubr.f32.mxu1 %v4292_v60  ;;  %v4317_v45 = vld [vmem:[#allocation34_spill] sm:$0xff] }
 0x199   :  { %2980 = vmatprep.subr.bf16.mxu1 %v3431_v47  ;;  %v4318_v47 = vld [vmem:[#allocation36_spill] sm:$0xff] }
 0x19a   :  { %2950 = vmatpush1.bf16.msra.mxu0 %v3339_v1  ;;  %v4304_v1 = vld [vmem:[#allocation41_spill] sm:$0xff] }
 0x19b   :  { %2952 = vmatprep.subr.bf16.mxu0 %v4294_v13 }
 0x19c   :  { %2982 = vmatpush1.bf16.msra.mxu1 %v4295_v18 }
 0x19d   :  { %2984 = vmatprep.subr.bf16.mxu1 %v4296_v26 }
 0x19e   :  { %2954 = vmatpush1.bf16.msra.mxu0 %v4297_v31 }
 0x19f   :  { %2956 = vmatprep.subr.bf16.mxu0 %v4298_v39 }
 0x1a0   :  { %2986 = vmatpush1.bf16.msra.mxu1 %v4299_v44 }
 0x1a1   :  { %2988 = vmatprep.subr.bf16.mxu1 %v4300_v52 }
 0x1a2   :  { %2958 = vmatpush1.bf16.msra.mxu0 %v4301_v57 }
 0x1a3   :  { %2960 = vmatprep.subr.bf16.mxu0 %v4302_v63 }
 0x1a4   :  { %2990 = vmatpush1.bf16.msra.mxu1 %v4303_v2 }
 0x1a5   :  { %2992 = vmatprep.subr.bf16.mxu1 %v4304_v1 }
 0x1a6   :  { %2962 = vmatpush1.bf16.msra.mxu0 %v4305_v16 }
 0x1a7   :  { %2996 = vmatprep.subr.bf16.mxu0 %v4306_v20 }
 0x1a8   :  { %2994 = vmatpush1.bf16.msra.mxu1 %v4307_v34 }
 0x1a9   :  { %1434 = vmatmul.mubr.f32.vlgmr.msra.gmra.mrb[14].mxu0 %v3533_v32  ;;  %3027 = vmatprep.subr.bf16.mxu1 %v4306_v20 }
 0x1aa   :  { %2998 = vmatpush1.bf16.msra.mxu0 %v4308_v37  ;;  %1439 = vmatprep.mubr.f32.mxu0 %v4292_v60 }
 0x1ab   :  { %1523 = vmatmul.mubr.f32.vlgmr.msra.gmra.mrb[18].mxu1 %v3533_v32  ;;  %3000 = vmatprep.subr.bf16.mxu0 %v4309_v50 }
 0x1ac   :  { %3035 = vmatpush1.bf16.msra.mxu1 %v4308_v37  ;;  %1528 = vmatprep.mubr.f32.mxu1 %v4292_v60 }
 0x1ad   :  { %1440 = vmatmul.mubr.f32.gmra.mrb[16].mxu0 %v3559_v51  ;;  %3028 = vmatprep.subr.bf16.mxu1 %v4309_v50 }
 0x1ae   :  { %3002 = vmatpush1.bf16.msra.mxu0 %v4310_v55  ;;  %1445 = vmatprep.mubr.f32.mxu0 %v4292_v60 }
 0x1af   :  { %1529 = vmatmul.mubr.f32.gmra.mrb[20].mxu1 %v3559_v51  ;;  %3004 = vmatprep.subr.bf16.mxu0 %v4311_v11 }
 0x1b0   :  { %3036 = vmatpush1.bf16.msra.mxu1 %v4310_v55  ;;  %1534 = vmatprep.mubr.f32.mxu1 %v4292_v60 }
 0x1b1   :  { %1446 = vmatmul.mubr.f32.gmra.mrb[18].mxu0 %v3562_v53  ;;  %3029 = vmatprep.subr.bf16.mxu1 %v4311_v11 }
 0x1b2   :  { %3006 = vmatpush1.bf16.msra.mxu0 %v4312_v14  ;;  %1451 = vmatprep.mubr.f32.mxu0 %v4292_v60 }
 0x1b3   :  { %1535 = vmatmul.mubr.f32.gmra.mrb[22].mxu1 %v3562_v53  ;;  %3008 = vmatprep.subr.bf16.mxu0 %v4313_v38 }
 0x1b4   :  { %3037 = vmatpush1.bf16.msra.mxu1 %v4312_v14  ;;  %1540 = vmatprep.mubr.f32.mxu1 %v4292_v60 }
 0x1b5   :  { %1452 = vmatmul.mubr.f32.gmra.mrb[20].mxu0 %v3570_v8  ;;  %3030 = vmatprep.subr.bf16.mxu1 %v4313_v38 }
 0x1b6   :  { %3010 = vmatpush1.bf16.msra.mxu0 %v4314_v42  ;;  %1611 = vmatprep.mubr.f32.mxu0 %v4292_v60 }
 0x1b7   :  { %1541 = vmatmul.mubr.f32.gmra.mrb[24].mxu1 %v3570_v8  ;;  %3012 = vmatprep.subr.bf16.mxu0 %v4315_v62 }
 0x1b8   :  { %3038 = vmatpush1.bf16.msra.mxu1 %v4314_v42  ;;  %1623 = vmatprep.mubr.f32.mxu1 %v4292_v60 }
 0x1b9   :  { %3031 = vmatprep.subr.bf16.mxu1 %v4315_v62 }
 0x1ba   :  { %3014 = vmatpush1.bf16.msra.mxu0 %v4316_v5 }
 0x1bb   :  { %3016 = vmatprep.subr.bf16.mxu0 %v4317_v45 }
 0x1bc   :  { %3039 = vmatpush1.bf16.msra.mxu1 %v4316_v5 }
 0x1bd   :  { %3032 = vmatprep.subr.bf16.mxu1 %v4317_v45 }
 0x1be   :  { %3018 = vmatpush1.bf16.msra.mxu0 %v4318_v47 }
 0x1bf   :  { %3020 = vmatprep.subr.bf16.mxu0 %v4319_v15 }
 0x1c0   :  { %3040 = vmatpush1.bf16.msra.mxu1 %v4318_v47 }
 0x1c1   :  { %3033 = vmatprep.subr.bf16.mxu1 %v4319_v15 }
 0x1c2   :  { %3022 = vmatpush1.bf16.msra.mxu0 %v4320_v24 }
 0x1c3   :  { %3024 = vmatprep.subr.bf16.mxu0 %v4321_v19 }
 0x1c4   :  { %3041 = vmatpush1.bf16.msra.mxu1 %v4320_v24 }
 0x1c5   :  { %3034 = vmatprep.subr.bf16.mxu1 %v4321_v19 }
 0x1c6   :  { %3026 = vmatpush1.bf16.msra.mxu0 %v4322_v21 }
 0x1c8   :  { %3042 = vmatpush1.bf16.msra.mxu1 %v4322_v21 }
 0x1c9   :  { %1612 = vmatmul.mubr.f32.vlgmr.msra.gmra.mrb[22].mxu0 %v3533_v32 }
 0x1ca   :  { %1617 = vmatprep.mubr.f32.mxu0 %v4292_v60 }
 0x1cb   :  { %1624 = vmatmul.mubr.f32.vlgmr.msra.gmra.mrb[26].mxu1 %v3562_v53 }
 0x1cc   :  { %1629 = vmatprep.mubr.f32.mxu1 %v4292_v60 }
 0x1cd   :  { %1618 = vmatmul.mubr.f32.gmra.mrb[24].mxu0 %v3559_v51 }
 0x1cf   :  { %1630 = vmatmul.mubr.f32.gmra.mrb[28].mxu1 %v3570_v8 }
 0x234   :  { %v785_v56 = vpop.f32.mrb[6].mxu0 }
 0x235   :  { %v2675_v10 = vpop.f32.mrb[7].mxu0 }
 0x236   :  { %v855_v25 = vpop.f32.mrb[6].mxu1 }
 0x237   :  { %v2680_v7 = vpop.f32.mrb[7].mxu1 }
 0x238   :  { %v925_v46 = vpop.f32.mrb[8].mxu0 }
 0x239   :  { %v1144_v48 = vsub.f32 %v785_v56, %v925_v46  ;;  %v2685_v28 = vpop.f32.mrb[9].mxu0 }
 0x23a   :  { %v995_v41 = vpop.f32.mrb[8].mxu1 }
 0x23b   :  { %v1146_v32 = vmul.f32 0.0078125, %v1144_v48  ;;  %v1145_v36 = vsub.f32 %v855_v25, %v995_v41  ;;  %v2690_v54 = vpop.f32.mrb[9].mxu1 }
 0x23c   :  { %v1065_v0 = vpop.f32.mrb[4].mxu0 }
 0x23d   :  { %1148 = vst.msk [vmem:[#allocation10] sm:$0xf] %vm1141_vm9, %v1146_v32  ;;  %v1147_v58 = vmul.f32 0.0078125, %v1145_v36  ;;  %v1139_v59 = vmul.f32 0.0078125, %v1065_v0  ;;  %v2695_v61 = vpop.f32.mrb[5].mxu0 }
 0x23e   :  { %v1135_v43 = vpop.f32.mrb[4].mxu1 }
 0x23f   :  { %1149 = vst.msk [vmem:[#allocation10 + $0x4] sm:$0xf] %vm1141_vm9, %v1147_v58  ;;  %1142 = vst.msk [vmem:[#allocation9] sm:$0xf] %vm1141_vm9, %v1139_v59  ;;  %v1140_v4 = vmul.f32 0.0078125, %v1135_v43  ;;  %v2700_v12 = vpop.f32.mrb[5].mxu1 }
 0x241   :  { %1143 = vst.msk [vmem:[#allocation9 + $0x4] sm:$0xf] %vm1141_vm9, %v1140_v4 }
 0x25c   :  { %v3662_v3 = vpop.f32.mrb[10].mxu0 }
 0x25d   :  { %4323 = vst [vmem:[#allocation16_spill] sm:$0xff] %v3662_v3  ;;  %v3664_v9 = vpop.f32.mrb[11].mxu0  ;;  %v1248_v33 = vand.u32 2147483647, %v3662_v3 }
 0x25e   :  { %4324 = vst [vmem:[#allocation31_spill] sm:$0xff] %v3664_v9  ;;  %v1346_v17 = vpop.f32.mrb[10].mxu1  ;;  %v1247_v6 = vand.u32 2147483647, %v3664_v9 }
 0x25f   :  { %v1348_v22 = vpop.f32.mrb[11].mxu1  ;;  %1253 = vadd.xlane.f32.xlu1 %v1248_v33 }
 0x260   :  { %1251 = vadd.xlane.f32.xlu0 %v1247_v6  ;;  %v3668_v27 = vpop.f32.mrb[12].mxu0 }
 0x261   :  { %4325 = vst [vmem:[#allocation33_spill] sm:$0xff] %v3668_v27  ;;  %v3670_v49 = vpop.f32.mrb[13].mxu0 }
 0x262   :  { %4326 = vst [vmem:[#allocation17_spill] sm:$0xff] %v3670_v49  ;;  %v1352_v35 = vpop.f32.mrb[12].mxu1 }
 0x263   :  { %v1354_v40 = vpop.f32.mrb[13].mxu1 }
 0x266   :  { %v1358_v51 = vpop.f32.mrb[14].mxu1 }
 0x267   :  { %v1360_v53 = vpop.f32.mrb[15].mxu1 }
 0x26a   :  { %v1364_v8 = vpop.f32.mrb[16].mxu1 }
 0x26b   :  { %v1366_v13 = vpop.f32.mrb[17].mxu1 }
 0x27c   :  { %v1435_v18 = vpop.f32.mrb[14].mxu0 }
 0x27d   :  { %v1636_v26 = vcombine.low %v1346_v17, %v1435_v18  ;;  %v1637_v31 = vcombine.high %v1346_v17, %v1435_v18  ;;  %v1437_v39 = vpop.f32.mrb[15].mxu0 }
 0x27e   :  { %v1652_v44 = vcombine.low %v1348_v22, %v1437_v39  ;;  %v1653_v52 = vcombine.high %v1348_v22, %v1437_v39  ;;  %v3672_v57 = vpop.f32.mrb[18].mxu1 }
 0x27f   :  { %v1644_v63 = vrot.slane %v1636_v26, %v3494_v23  ;;  %v1651_v2 = vrot.slane %v1637_v31, %v3494_v23  ;;  %v3676_v1 = vpop.f32.mrb[19].mxu1 }
 0x280   :  { %v1660_v16 = vrot.slane %v1652_v44, %v3494_v23  ;;  %v1667_v20 = vrot.slane %v1653_v52, %v3494_v23  ;;  %v1441_v34 = vpop.f32.mrb[16].mxu0 }
 0x281   :  { %v1704_v37 = vcombine.low %v1352_v35, %v1441_v34  ;;  %v1705_v50 = vcombine.high %v1352_v35, %v1441_v34  ;;  %v1443_v55 = vpop.f32.mrb[17].mxu0 }
 0x282   :  { %v1668_v11 = vcombine.low %v1644_v63, %v1660_v16  ;;  %v1669_v14 = vcombine.high %v1644_v63, %v1660_v16  ;;  %v1684_v38 = vcombine.low %v1651_v2, %v1667_v20  ;;  %v1685_v42 = vcombine.high %v1651_v2, %v1667_v20  ;;  %v3680_v62 = vpop.f32.mrb[20].mxu1 }
 0x283   :  { %v1712_v5 = vrot.slane %v1704_v37, %v3494_v23  ;;  %v1719_v45 = vrot.slane %v1705_v50, %v3494_v23  ;;  %v1720_v47 = vcombine.low %v1354_v40, %v1443_v55  ;;  %v1721_v15 = vcombine.high %v1354_v40, %v1443_v55  ;;  %v3684_v24 = vpop.f32.mrb[21].mxu1 }
 0x284   :  { %v1447_v19 = vpop.f32.mrb[18].mxu0  ;;  %v1676_v52 = vrot.slane %v1668_v11, %v3500_v30  ;;  %v1683_v63 = vrot.slane %v1669_v14, %v3500_v30  ;;  %v1692_v2 = vrot.slane %v1684_v38, %v3500_v30  ;;  %v1699_v55 = vrot.slane %v1685_v42, %v3500_v30 }
 0x285   :  { %v1728_v21 = vrot.slane %v1720_v47, %v3494_v23  ;;  %v1735_v56 = vrot.slane %v1721_v15, %v3494_v23  ;;  %v1772_v10 = vcombine.low %v1358_v51, %v1447_v19  ;;  %v1773_v25 = vcombine.high %v1358_v51, %v1447_v19  ;;  %v1449_v7 = vpop.f32.mrb[19].mxu0 }
 0x286   :  { %v1788_v46 = vcombine.low %v1360_v53, %v1449_v7  ;;  %v1789_v48 = vcombine.high %v1360_v53, %v1449_v7  ;;  %v3688_v28 = vpop.f32.mrb[22].mxu1  ;;  %v3721_v14 = vmul.f32 %v1683_v63, %v1683_v63  ;;  %v3723_v38 = vmul.f32 %v1692_v2, %v1692_v2 }
 0x287   :  { %v1736_v41 = vcombine.low %v1712_v5, %v1728_v21  ;;  %v1737_v32 = vcombine.high %v1712_v5, %v1728_v21  ;;  %v1752_v36 = vcombine.low %v1719_v45, %v1735_v56  ;;  %v1753_v54 = vcombine.high %v1719_v45, %v1735_v56  ;;  %v3690_v0 = vpop.f32.mrb[23].mxu1 }
 0x288   :  { %v1780_v58 = vrot.slane %v1772_v10, %v3494_v23  ;;  %v1787_v59 = vrot.slane %v1773_v25, %v3494_v23  ;;  %v1796_v61 = vrot.slane %v1788_v46, %v3494_v23  ;;  %v1803_v43 = vrot.slane %v1789_v48, %v3494_v23  ;;  %v1453_v4 = vpop.f32.mrb[20].mxu0 }
 0x289   :  { %v1840_v12 = vcombine.low %v1364_v8, %v1453_v4  ;;  %v1841_v33 = vcombine.high %v1364_v8, %v1453_v4  ;;  %v1455_v17 = vpop.f32.mrb[21].mxu0  ;;  %v1744_v50 = vrot.slane %v1736_v41, %v3500_v30  ;;  %v1751_v11 = vrot.slane %v1737_v32, %v3500_v30 }
 0x28a   :  { %v1804_v6 = vcombine.low %v1780_v58, %v1796_v61  ;;  %v1805_v22 = vcombine.high %v1780_v58, %v1796_v61  ;;  %v1820_v35 = vcombine.low %v1787_v59, %v1803_v43  ;;  %v1821_v40 = vcombine.high %v1787_v59, %v1803_v43  ;;  %v3696_v51 = vpop.f32.mrb[24].mxu1 }
 0x28b   :  { %v3699_v53 = vrot.slane %v1840_v12, %v3494_v23  ;;  %v1855_v18 = vrot.slane %v1841_v33, %v3494_v23  ;;  %v1856_v26 = vcombine.low %v1366_v13, %v1455_v17  ;;  %v1857_v31 = vcombine.high %v1366_v13, %v1455_v17  ;;  %v3702_v39 = vpop.f32.mrb[25].mxu1 }
 0x28c   :  { %v1812_v37 = vrot.slane %v1804_v6, %v3500_v30  ;;  %v3719_v5 = vmul.f32 %v1676_v52, %v1676_v52  ;;  %v1700_v15 = vcombine.high %v1676_v52, %v4292_v60  ;;  %v1760_v19 = vrot.slane %v1752_v36, %v3500_v30 }
 0x28d   :  { %v3705_v44 = vrot.slane %v1856_v26, %v3494_v23  ;;  %v1871_v8 = vrot.slane %v1857_v31, %v3494_v23  ;;  %v1767_v21 = vrot.slane %v1753_v54, %v3500_v30  ;;  %v3730_v56 = vmul.f32 %v1744_v50, %v1744_v50 }
 0x28e   :  { %v1836_v47 = vcombine.high %v1812_v37, %v4292_v60  ;;  %v3732_v42 = vmul.f32 %v1699_v55, %v1699_v55  ;;  %v1819_v10 = vrot.slane %v1805_v22, %v3500_v30  ;;  %v1768_v25 = vcombine.high %v1744_v50, %v4292_v60 }
 0x28f   :  { %v1873_v20 = vcombine.high %v3699_v53, %v3705_v44  ;;  %v1888_v13 = vcombine.low %v1855_v18, %v1871_v8  ;;  %v1889_v34 = vcombine.high %v1855_v18, %v1871_v8  ;;  %v3736_v7 = vmul.f32 %v1751_v11, %v1751_v11 }
 0x290   :  { %v3738_v46 = vmul.f32 %v1812_v37, %v1812_v37  ;;  %v1701_v48 = vcombine.high %v1683_v63, %v4292_v60  ;;  %v1828_v41 = vrot.slane %v1820_v35, %v3500_v30  ;;  %v1702_v32 = vcombine.high %v1692_v2, %v4292_v60 }
 0x291   :  { %v3744_v36 = vrot.slane %v1873_v20, %v3500_v30  ;;  %v1835_v54 = vrot.slane %v1821_v40, %v3500_v30  ;;  %v1769_v58 = vcombine.high %v1751_v11, %v4292_v60  ;;  %v3748_v59 = vmul.f32 %v1836_v47, %v1836_v47 }
 0x292   :  { %v3750_v61 = vmul.f32 %v1700_v15, %v1700_v15  ;;  %v3752_v43 = vmul.f32 %v1760_v19, %v1760_v19  ;;  %v3754_v4 = vmul.f32 %v1767_v21, %v1767_v21  ;;  %v3756_v12 = vmul.f32 %v1819_v10, %v1819_v10 }
 0x293   :  { %v3758_v33 = vmul.f32 %v1768_v25, %v1768_v25  ;;  %v1703_v17 = vcombine.high %v1699_v55, %v4292_v60  ;;  %v3762_v6 = vrot.slane %v1888_v13, %v3500_v30  ;;  %v3764_v22 = vmul.f32 %v1701_v48, %v1701_v48 }
 0x294   :  { %v3766_v35 = vmul.f32 %v1828_v41, %v1828_v41  ;;  %v1837_v40 = vcombine.high %v1819_v10, %v4292_v60  ;;  %v1770_v18 = vcombine.high %v1760_v19, %v4292_v60  ;;  %v3770_v26 = vmul.f32 %v1702_v32, %v1702_v32 }
 0x295   :  { %v3774_v31 = vmul.f32 %v3744_v36, %v3744_v36  ;;  %v3776_v8 = vmul.f32 %v1835_v54, %v1835_v54  ;;  %v3778_v52 = vmul.f32 %v1769_v58, %v1769_v58  ;;  %v3781_v2 = vcombine.high %v1828_v41, %v4292_v60 }
 0x296   :  { %v3784_v20 = vrot.slane %v1889_v34, %v3500_v30  ;;  %v3787_v13 = vcombine.high %v1835_v54, %v4292_v60  ;;  %v3790_v37 = vcombine.high %v1767_v21, %v4292_v60  ;;  %v3794_v47 = vmul.f32 %v1703_v17, %v1703_v17 }
 0x297   :  { %v3798_v15 = vmul.f32 %v3762_v6, %v3762_v6  ;;  %v3802_v25 = vmul.f32 %v1837_v40, %v1837_v40  ;;  %v3804_v21 = vmul.f32 %v1770_v18, %v1770_v18 }
 0x29c   :  { %v1613_v63 = vpop.f32.mrb[22].mxu0 }
 0x29d   :  { %v1908_v50 = vcombine.low %v3672_v57, %v1613_v63  ;;  %v1909_v55 = vcombine.high %v3672_v57, %v1613_v63  ;;  %v1615_v11 = vpop.f32.mrb[23].mxu0 }
 0x29e   :  { %v1924_v34 = vcombine.low %v3676_v1, %v1615_v11  ;;  %v1925_v19 = vcombine.high %v3676_v1, %v1615_v11  ;;  %v1625_v10 = vpop.f32.mrb[26].mxu1 }
 0x29f   :  { %v1916_v48 = vrot.slane %v1908_v50, %v3494_v23  ;;  %v1923_v57 = vrot.slane %v1909_v55, %v3494_v23  ;;  %v2044_v41 = vcombine.low %v3688_v28, %v1625_v10  ;;  %v2045_v32 = vcombine.high %v3688_v28, %v1625_v10  ;;  %v1627_v54 = vpop.f32.mrb[27].mxu1 }
 0x2a0   :  { %v1932_v58 = vrot.slane %v1924_v34, %v3494_v23  ;;  %v1939_v17 = vrot.slane %v1925_v19, %v3494_v23  ;;  %v2060_v1 = vcombine.low %v3690_v0, %v1627_v54  ;;  %v2061_v40 = vcombine.high %v3690_v0, %v1627_v54  ;;  %v1619_v63 = vpop.f32.mrb[24].mxu0 }
 0x2a1   :  { %v3815_v18 = vrot.slane %v2044_v41, %v3494_v23  ;;  %v3818_v50 = vrot.slane %v2045_v32, %v3494_v23  ;;  %v1976_v55 = vcombine.low %v3680_v62, %v1619_v63  ;;  %v1977_v28 = vcombine.high %v3680_v62, %v1619_v63  ;;  %v1621_v11 = vpop.f32.mrb[25].mxu0 }
 0x2a2   :  { %v1940_v10 = vcombine.low %v1916_v48, %v1932_v58  ;;  %v1941_v34 = vcombine.high %v1916_v48, %v1932_v58  ;;  %v1956_v45 = vcombine.low %v1923_v57, %v1939_v17  ;;  %v1957_v19 = vcombine.high %v1923_v57, %v1939_v17  ;;  %v1631_v16 = vpop.f32.mrb[28].mxu1 }
 0x2a3   :  { %v3823_v29 = vrot.slane %v2060_v1, %v3494_v23  ;;  %v3826_v0 = vrot.slane %v2061_v40, %v3494_v23  ;;  %v1984_v41 = vrot.slane %v1976_v55, %v3494_v23  ;;  %v3830_v32 = vrot.slane %v1977_v28, %v3494_v23  ;;  %v1633_v54 = vpop.f32.mrb[29].mxu1 }
 0x2a4   :  { %v1992_v62 = vcombine.low %v3684_v24, %v1621_v11  ;;  %v1993_v48 = vcombine.high %v3684_v24, %v1621_v11  ;;  %v2112_v57 = vcombine.low %v3696_v51, %v1631_v16  ;;  %v2113_v58 = vcombine.high %v3696_v51, %v1631_v16 }
 0x2a5   :  { %v2076_v17 = vcombine.low %v3815_v18, %v3823_v29  ;;  %v2077_v1 = vcombine.high %v3815_v18, %v3823_v29  ;;  %v2128_v16 = vcombine.low %v3702_v39, %v1633_v54  ;;  %v2129_v29 = vcombine.high %v3702_v39, %v1633_v54 }
 0x2a6   :  { %v2000_v55 = vrot.slane %v1992_v62, %v3494_v23  ;;  %v2007_v24 = vrot.slane %v1993_v48, %v3494_v23  ;;  %v3847_v28 = vrot.slane %v2112_v57, %v3494_v23  ;;  %v3850_v51 = vrot.slane %v2113_v58, %v3494_v23 }
 0x2a7   :  { %v1948_v18 = vrot.slane %v1940_v10, %v3500_v30  ;;  %v1955_v11 = vrot.slane %v1941_v34, %v3500_v30  ;;  %v3859_v57 = vrot.slane %v2128_v16, %v3494_v23  ;;  %v3862_v58 = vrot.slane %v2129_v29, %v3494_v23 }
 0x2a8   :  { %v2008_v40 = vcombine.low %v1984_v41, %v2000_v55  ;;  %v2009_v63 = vcombine.high %v1984_v41, %v2000_v55  ;;  %v2024_v62 = vcombine.low %v3830_v32, %v2007_v24  ;;  %v2025_v48 = vcombine.high %v3830_v32, %v2007_v24 }
 0x2a9   :  { %4327 = vst [vmem:[#allocation18_spill] sm:$0xff] %v3859_v57  ;;  %v2212_v9 = vmul.f32 %v1948_v18, %v1948_v18  ;;  %v2214_v49 = vmul.f32 %v1955_v11, %v1955_v11  ;;  %v1964_v10 = vrot.slane %v1956_v45, %v3500_v30  ;;  %v2084_v34 = vrot.slane %v2076_v17, %v3500_v30 }
 0x2aa   :  { %v2016_v39 = vrot.slane %v2008_v40, %v3500_v30  ;;  %v3868_v41 = vrot.slane %v1957_v19, %v3500_v30  ;;  %v2145_v54 = vcombine.high %v3847_v28, %v3859_v57  ;;  %v2023_v29 = vrot.slane %v2009_v63, %v3500_v30 }
 0x2ab   :  { %v2244_v40 = vadd.f32 %v2212_v9, %v3719_v5  ;;  %v2246_v45 = vadd.f32 %v2214_v49, %v3721_v14  ;;  %v2216_v24 = vmul.f32 %v1964_v10, %v1964_v10  ;;  %v2108_v19 = vcombine.high %v2084_v34, %v4292_v60 }
 0x2ac   :  { %v2220_v17 = vmul.f32 %v2016_v39, %v2016_v39  ;;  %v2218_v16 = vmul.f32 %v3868_v41, %v3868_v41  ;;  %v1972_v32 = vcombine.high %v1948_v18, %v4292_v60  ;;  %v3890_v9 = vmul.f32 %v3781_v2, %v3781_v2 }
 0x2ad   :  { %v2277_v23 = vsel %vm2276_vm10, %v2244_v40, 0.0  ;;  %v2248_v55 = vadd.f32 %v2216_v24, %v3723_v38  ;;  %v2229_v49 = vmul.f32 %v2108_v19, %v2108_v19  ;;  %v2222_v14 = vmul.f32 %v2023_v29, %v2023_v29 }
 0x2ae   :  { %v2252_v3 = vadd.f32 %v2220_v17, %v3730_v56  ;;  %2278 = vadd.xlane.f32.xlu0 %v2277_v23  ;;  %v2250_v5 = vadd.f32 %v2218_v16, %v3732_v42  ;;  %v2213_v27 = vmul.f32 %v1972_v32, %v1972_v32  ;;  %v2032_v18 = vrot.slane %v2024_v62, %v3500_v30 }
 0x2af   :  { %v2228_v57 = vmul.f32 %v2084_v34, %v2084_v34  ;;  %v3897_v56 = vmul.f32 %v3784_v20, %v3784_v20  ;;  %v2283_v38 = vsel %vm2276_vm10, %v2246_v45, 0.0  ;;  %v2261_v2 = vadd.f32 %v2229_v49, %v3748_v59 }
 0x2b0   :  { %v2301_v63 = vsel %vm2276_vm10, %v2252_v3, 0.0  ;;  %v2254_v23 = vadd.f32 %v2222_v14, %v3736_v7  ;;  %v2245_v42 = vadd.f32 %v2213_v27, %v3750_v61  ;;  %v2224_v40 = vmul.f32 %v2032_v18, %v2032_v18 }
 0x2b1   :  { %2302 = vadd.xlane.f32.xlu1 %v2301_v63  ;;  %v3904_v32 = vadd.f32 %v2228_v57, %v3738_v46  ;;  %v3907_v3 = vrot.slane %v2025_v48, %v3500_v30  ;;  %v2091_v62 = vrot.slane %v2077_v1, %v3500_v30  ;;  %v2040_v34 = vcombine.high %v2016_v39, %v4292_v60 }
 0x2b2   :  { %2284 = vadd.xlane.f32.xlu0 %v2283_v38  ;;  %v3913_v45 = vmul.f32 %v3787_v13, %v3787_v13  ;;  %v3917_v7 = vmul.f32 %v3790_v37, %v3790_v37  ;;  %v4328_v27 = vcombine.low %v3699_v53, %v3705_v44  ;;  %v2328_v59 = vsel %vm2276_vm10, %v2261_v2, 0.0 }
 0x2b3   :  { %v2256_v61 = vadd.f32 %v2224_v40, %v3752_v43  ;;  %v2226_v1 = vmul.f32 %v3907_v3, %v3907_v3  ;;  %v2230_v48 = vmul.f32 %v2091_v62, %v2091_v62  ;;  %v2221_v13 = vmul.f32 %v2040_v34, %v2040_v34 }
 0x2b4   :  { %v1880_v46 = vrot.slane %v4328_v27, %v3500_v30  ;;  %v1973_v57 = vcombine.high %v1955_v11, %v4292_v60  ;;  %v4329_v37 = vcombine.low %v3818_v50, %v3826_v0  ;;  %v1974_v53 = vcombine.high %v1964_v10, %v4292_v60 }
 0x2b5   :  { %2329 = vadd.xlane.f32.xlu1 %v2328_v59  ;;  %v2289_v44 = vsel %vm2276_vm10, %v2248_v55, 0.0  ;;  %v2258_v17 = vadd.f32 %v2226_v1, %v3754_v4  ;;  %v3936_v43 = vadd.f32 %v2230_v48, %v3756_v12  ;;  %v2159_v24 = vrot.slane %v2145_v54, %v3500_v30 }
 0x2b6   :  { %v2100_v39 = vrot.slane %v4329_v37, %v3500_v30  ;;  %2290 = vadd.xlane.f32.xlu0 %v2289_v44  ;;  %v2253_v19 = vadd.f32 %v2221_v13, %v3758_v33  ;;  %v2215_v11 = vmul.f32 %v1973_v57, %v1973_v57  ;;  %v2217_v49 = vmul.f32 %v1974_v53, %v1974_v53 }
 0x2b7   :  { %v2307_v14 = vsel %vm2276_vm10, %v2254_v23, 0.0  ;;  %v2238_v63 = vmul.f32 %v2159_v24, %v2159_v24  ;;  %v4330_v10 = vcombine.high %v3818_v50, %v3826_v0  ;;  %v1905_v4 = vcombine.high %v3744_v36, %v4292_v60 }
 0x2b8   :  { %v2232_v16 = vmul.f32 %v2100_v39, %v2100_v39  ;;  %v2295_v12 = vsel %vm2276_vm10, %v2250_v5, 0.0  ;;  %v3949_v54 = vadd.f32 %v2215_v11, %v3764_v22  ;;  %v3955_v38 = vadd.f32 %v2217_v49, %v3770_v26  ;;  %v4333_v11 = vld [vmem:[#allocation18_spill] sm:$0xff] }
 0x2b9   :  { %v2107_v55 = vrot.slane %v4330_v10, %v3500_v30  ;;  %2308 = vadd.xlane.f32.xlu1 %v2307_v14  ;;  %v3958_v2 = vadd.f32 %v2238_v63, %v3774_v31  ;;  %v2041_v0 = vcombine.high %v2023_v29, %v4292_v60  ;;  %v1975_v36 = vcombine.high %v3868_v41, %v4292_v60 }
 0x2ba   :  { %v3952_v33 = vadd.f32 %v2232_v16, %v3766_v35  ;;  %2296 = vadd.xlane.f32.xlu0 %v2295_v12  ;;  %v4331_v22 = vcombine.low %v3850_v51, %v3862_v58  ;;  %v2204_v35 = vmul.f32 %v1880_v46, %v1880_v46  ;;  %v1906_v26 = vcombine.high %v3762_v6, %v4292_v60 }
 0x2bb   :  { %v2234_v50 = vmul.f32 %v2107_v55, %v2107_v55  ;;  %v1907_v31 = vcombine.high %v3784_v20, %v4292_v60  ;;  %v2313_v23 = vsel %vm2276_vm10, %v2256_v61, 0.0  ;;  %v2223_v40 = vmul.f32 %v2041_v0, %v2041_v0 }
 0x2bc   :  { %v2168_v5 = vrot.slane %v4331_v22, %v3500_v30  ;;  %v2219_v41 = vmul.f32 %v1975_v36, %v1975_v36  ;;  %v2109_v27 = vcombine.high %v2091_v62, %v4292_v60  ;;  %v2042_v59 = vcombine.high %v2032_v18, %v4292_v60  ;;  %v4335_v36 = vld [vmem:[#allocation33_spill] sm:$0xff] }
 0x2bd   :  { %v3973_v29 = vadd.f32 %v2234_v50, %v3776_v8  ;;  %2314 = vadd.xlane.f32.xlu1 %v2313_v23  ;;  %v2110_v1 = vcombine.high %v2100_v39, %v4292_v60  ;;  %v2280_v6 = vsel %vm2276_vm10, %v2245_v42, 0.0  ;;  %v2255_v48 = vadd.f32 %v2223_v40, %v3778_v52 }
 0x2be   :  { %v2240_v34 = vmul.f32 %v2168_v5, %v2168_v5  ;;  %v3981_v20 = vadd.f32 %v2219_v41, %v3794_v47  ;;  %v4332_v8 = vcombine.high %v3850_v51, %v3862_v58  ;;  %2281 = vadd.xlane.f32.xlu0 %v2280_v6  ;;  %v2231_v62 = vmul.f32 %v2109_v27, %v2109_v27 }
 0x2bf   :  { %v2225_v57 = vmul.f32 %v2042_v59, %v2042_v59  ;;  %v2233_v18 = vmul.f32 %v2110_v1, %v2110_v1  ;;  %v2319_v37 = vsel %vm2276_vm10, %v2258_v17, 0.0  ;;  %v2111_v42 = vcombine.high %v2107_v55, %v4292_v60 }
 0x2c0   :  { %v2175_v61 = vrot.slane %v4332_v8, %v3500_v30  ;;  %v2272_v13 = vadd.f32 %v2240_v34, %v3798_v15  ;;  %v1904_v52 = vcombine.high %v1880_v46, %v4292_v60  ;;  %v2325_v47 = vsel %vm2276_vm10, %v3904_v32, 0.0 }
 0x2c1   :  { %2320 = vadd.xlane.f32.xlu1 %v2319_v37  ;;  %v2263_v51 = vadd.f32 %v2231_v62, %v3802_v25  ;;  %v2257_v58 = vadd.f32 %v2225_v57, %v3804_v21  ;;  %v2265_v15 = vadd.f32 %v2233_v18, %v3890_v9  ;;  %v2235_v44 = vmul.f32 %v2111_v42, %v2111_v42  ;;  %v4338_v62 = vld [vmem:[#allocation17_spill] sm:$0xff]  ;;  %v4339_v37 = vld [vmem:[#allocation31_spill] sm:$0xff] }
 0x2c2   :  { %v2242_v39 = vmul.f32 %v2175_v61, %v2175_v61  ;;  %v2043_v17 = vcombine.high %v3907_v3, %v4292_v60  ;;  %v4334_v46 = vcombine.low %v3847_v28, %v4333_v11  ;;  %2326 = vadd.xlane.f32.xlu0 %v2325_v47  ;;  %v2177_v32 = vcombine.high %v2159_v24, %v4292_v60 }
 0x2c3   :  { %v2207_v49 = vmul.f32 %v1905_v4, %v1905_v4  ;;  %v2209_v25 = vmul.f32 %v1906_v26, %v1906_v26  ;;  %v2211_v14 = vmul.f32 %v1907_v31, %v1907_v31  ;;  %v2304_v21 = vsel %vm2276_vm10, %v2253_v19, 0.0 }
 0x2c4   :  { %v2274_v53 = vadd.f32 %v2242_v39, %v3897_v56  ;;  %v2152_v16 = vrot.slane %v4334_v46, %v3500_v30  ;;  %v2267_v9 = vadd.f32 %v2235_v44, %v3913_v45  ;;  %v2227_v56 = vmul.f32 %v2043_v17, %v2043_v17 }
 0x2c5   :  { %2305 = vadd.xlane.f32.xlu1 %v2304_v21  ;;  %v2239_v10 = vmul.f32 %v2177_v32, %v2177_v32  ;;  %v2178_v55 = vcombine.high %v2168_v5, %v4292_v60  ;;  %v2179_v30 = vcombine.high %v2175_v61, %v4292_v60  ;;  %v2331_v28 = vsel %vm2276_vm10, %v3936_v43, 0.0  ;;  %v4337_v43 = vld [vmem:[#allocation16_spill] sm:$0xff] }
 0x2c6   :  { %v2236_v63 = vmul.f32 %v2152_v16, %v2152_v16  ;;  %v2176_v3 = vcombine.high %v2152_v16, %v4292_v60  ;;  %v2259_v24 = vadd.f32 %v2227_v56, %v3917_v7  ;;  %v2205_v12 = vmul.f32 %v1904_v52, %v1904_v52  ;;  %2332 = vadd.xlane.f32.xlu0 %v2331_v28 }
 0x2c7   :  { %v2271_v45 = vadd.f32 %v2239_v10, %v2207_v49  ;;  %v2241_v50 = vmul.f32 %v2178_v55, %v2178_v55  ;;  %v2243_v0 = vmul.f32 %v2179_v30, %v2179_v30  ;;  %v4336_v22 = vand.u32 2147483647, %v4335_v36 }
 0x2c8   :  { %v2268_v4 = vadd.f32 %v2236_v63, %v2204_v35  ;;  %v2237_v19 = vmul.f32 %v2176_v3, %v2176_v3  ;;  %v2286_v60 = vsel %vm2276_vm10, %v3949_v54, 0.0  ;;  %v1265_v7 = vmul.f32 %v4337_v43, %v4337_v43 }
 0x2c9   :  { %1257 = vadd.xlane.f32.xlu1 %v4336_v22  ;;  %v2273_v31 = vadd.f32 %v2241_v50, %v2209_v25  ;;  %v2275_v5 = vadd.f32 %v2243_v0, %v2211_v14  ;;  %v2337_v40 = vsel %vm2276_vm10, %v3952_v33, 0.0  ;;  %v2355_v41 = vsel %vm2276_vm10, %v3958_v2, 0.0 }
 0x2ca   :  { %v2269_v26 = vadd.f32 %v2237_v19, %v2205_v12  ;;  %2287 = vadd.xlane.f32.xlu0 %v2286_v60  ;;  %v2292_v54 = vsel %vm2276_vm10, %v3955_v38, 0.0  ;;  %v2310_v34 = vsel %vm2276_vm10, %v2255_v48, 0.0  ;;  %v2343_v27 = vsel %vm2276_vm10, %v3973_v29, 0.0 }
 0x2cb   :  { %v2364_v35 = vsel %vm2276_vm10, %v2273_v31, 0.0  ;;  %v2370_v23 = vsel %vm2276_vm10, %v2275_v5, 0.0  ;;  %v2361_v59 = vsel %vm2276_vm10, %v2272_v13, 0.0  ;;  %v2298_v33 = vsel %vm2276_vm10, %v3981_v20, 0.0 }
 0x2cc   :  { %v2316_v2 = vsel %vm2276_vm10, %v2257_v58, 0.0  ;;  %v2334_v38 = vsel %vm2276_vm10, %v2263_v51, 0.0  ;;  %v2367_v1 = vsel %vm2276_vm10, %v2274_v53, 0.0  ;;  %v2340_v6 = vsel %vm2276_vm10, %v2265_v15, 0.0 }
 0x2cd   :  { %1270 = vadd.xlane.f32.xlu1 %v1265_v7  ;;  %v2322_v29 = vsel %vm2276_vm10, %v2259_v24, 0.0  ;;  %v2346_v48 = vsel %vm2276_vm10, %v2267_v9, 0.0  ;;  %v2352_v20 = vsel %vm2276_vm10, %v2269_v26, 0.0  ;;  %v2349_v8 = vsel %vm2276_vm10, %v2268_v4, 0.0 }
 0x2ce   :  { %2338 = vadd.xlane.f32.xlu0 %v2337_v40  ;;  %v2358_v61 = vsel %vm2276_vm10, %v2271_v45, 0.0  ;;  %v1249_v57 = vand.u32 2147483647, %v4338_v62  ;;  %v1264_v39 = vmul.f32 %v4339_v37, %v4339_v37  ;;  %v1266_v42 = vmul.f32 %v4338_v62, %v4338_v62 }
 0x2cf   :  { %v1267_v52 = vmul.f32 %v4335_v36, %v4335_v36 }
 0x2d1   :  { %2356 = vadd.xlane.f32.xlu1 %v2355_v41 }
 0x2d2   :  { %2293 = vadd.xlane.f32.xlu0 %v2292_v54 }
 0x2d5   :  { %2311 = vadd.xlane.f32.xlu1 %v2310_v34 }
 0x2d6   :  { %2344 = vadd.xlane.f32.xlu0 %v2343_v27 }
 0x2d9   :  { %2362 = vadd.xlane.f32.xlu1 %v2361_v59 }
 0x2da   :  { %2299 = vadd.xlane.f32.xlu0 %v2298_v33 }
 0x2dd   :  { %2317 = vadd.xlane.f32.xlu1 %v2316_v2 }
 0x2de   :  { %2335 = vadd.xlane.f32.xlu0 %v2334_v38 }
 0x2e1   :  { %2368 = vadd.xlane.f32.xlu1 %v2367_v1 }
 0x2e2   :  { %2341 = vadd.xlane.f32.xlu0 %v2340_v6 }
 0x2e5   :  { %2323 = vadd.xlane.f32.xlu1 %v2322_v29 }
 0x2e6   :  { %2347 = vadd.xlane.f32.xlu0 %v2346_v48 }
 0x2e9   :  { %2353 = vadd.xlane.f32.xlu1 %v2352_v20 }
 0x2ea   :  { %2350 = vadd.xlane.f32.xlu0 %v2349_v8 }
 0x2ec   :  { %v1254_v13 = vpop.xlane.xlu1 %1253 }
 0x2ed   :  { %2359 = vadd.xlane.f32.xlu1 %v2358_v61  ;;  %1261 = vst.msk [vmem:[%s4203_s3 + $0x8] sm:$0xff] %vm1259_vm11, %v1254_v13  ;;  %v1252_v18 = vpop.xlane.xlu0 %1251 }
 0x2ee   :  { %1260 = vst.msk [vmem:[%s4203_s3] sm:$0xff] %vm1259_vm11, %v1252_v18  ;;  %1255 = vadd.xlane.f32.xlu0 %v1249_v57 }
 0x2f1   :  { %2365 = vadd.xlane.f32.xlu1 %v2364_v35 }
 0x2f2   :  { %1268 = vadd.xlane.f32.xlu0 %v1264_v39 }
 0x2f5   :  { %2371 = vadd.xlane.f32.xlu1 %v2370_v23 }
 0x2f6   :  { %1272 = vadd.xlane.f32.xlu0 %v1266_v42 }
 0x2f9   :  { %1274 = vadd.xlane.f32.xlu1 %v1267_v52 }
 0x2fa   :  { %3146 = shalt.err (!%p3143_p0)
}
 0x2fb   :  { %s3147_s25 = scalar_lea.hbm %s4206_s6, 128 }
 0x2fc   :  { %p3148_p1 = scmp.ne.s32.totalorder %s4206_s6, %s3147_s25  ;;  %p3151_p2 = scmp.lt.u32.totalorder %s3147_s25, %s4206_s6 }
 0x2fe   :  { %p3153_p3 = pnand %p3151_p2, %p3148_p1 }
 0x300   :  { %3156 = shalt.err (!%p3153_p3)
}
 0x301   :  { %s3200_s8 = smov 4   ;;  %s3157_s11 = scalar_lea.vmem %s2603_s23, 128 }
 0x302   :  { %2596 = dma.vmem_to_hbm [thread:$0]  %s2591_s21, 128, %s4206_s6, [#allocation5], %s3189_s12, %s3189_s12, %s3200_s8  }
 0x303   :  { %p3158_p4 = scmp.ne.s32.totalorder %s2603_s23, %s3157_s11  ;;  %p3162_p5 = scmp.lt.s32.totalorder %s2603_s23, %s2603_s23 }
 0x304   :  { %p3163_p6 = scmp.lt.s32.totalorder %s3157_s11, %s3157_s11 }
 0x306   :  { %p3164_p7 = por %p3163_p6, %p3162_p5 }
 0x308   :  { %p3165_p8 = pnand %p3164_p7, %p3158_p4 }
 0x30a   :  { %3168 = shalt.err (!%p3165_p8)
}
 0x30b   :  { %s3169_s14 = scalar_lea.hbm %s4207_s7, 128 }
 0x30c   :  { %p3170_p9 = scmp.ne.s32.totalorder %s4207_s7, %s3169_s14  ;;  %p3173_p10 = scmp.lt.u32.totalorder %s3169_s14, %s4207_s7 }
 0x30e   :  { %p3175_p11 = pnand %p3173_p10, %p3170_p9 }
 0x310   :  { %3178 = shalt.err (!%p3175_p11)
}
 0x311   :  { %2608 = dma.vmem_to_hbm [thread:$0]  %s2603_s23, 128, %s4207_s7, [#allocation11], %s3189_s12, %s3189_s12, %s3200_s8   ;;  %v4340_v14 = vlaneseq  ;;  %v4341_v63 = vld [vmem:[#allocation45_spill] sm:$0xff]  ;;  %vm2535_vm12 = vcmask 1041409   ;;  %vm2537_vm13 = vcmask 1042434   ;;  %vm2539_vm14 = vcmask 1043459  }
 0x312   :  { %vm2541_vm15 = vcmask 1044484   ;;  %vm2543_vm0 = vcmask 1045509   ;;  %vm2545_vm1 = vcmask 1046534   ;;  %vm2547_vm2 = vcmask 1047559  }
 0x313   :  { %v2406_v21 = vand.u32 127, %v4340_v14  ;;  %vm2574_vm3 = vcmask 31744  }
 0x315   :  { %v4094_v3 = vsub.s32 %v2406_v21, %v4341_v63 }
 0x33b   :  { %v2279_v47 = vpop.xlane.xlu0 %2278 }
 0x33c   :  { %v2410_v28 = vrot.slane %v2279_v47, %v4094_v3 }
 0x33e   :  { %v2303_v51 = vpop.xlane.xlu1 %2302 }
 0x33f   :  { %v2285_v58 = vpop.xlane.xlu0 %2284  ;;  %v2442_v7 = vrot.slane %v2303_v51, %v4094_v3 }
 0x340   :  { %v2418_v19 = vrot.slane %v2285_v58, %v4094_v3 }
 0x342   :  { %v2330_v15 = vpop.xlane.xlu1 %2329 }
 0x343   :  { %v2291_v53 = vpop.xlane.xlu0 %2290  ;;  %v2478_v1 = vrot.slane %v2330_v15, %v4094_v3 }
 0x344   :  { %v2426_v26 = vrot.slane %v2291_v53, %v4094_v3 }
 0x346   :  { %v2309_v44 = vpop.xlane.xlu1 %2308 }
 0x347   :  { %v2297_v17 = vpop.xlane.xlu0 %2296  ;;  %v2450_v59 = vrot.slane %v2309_v44, %v4094_v3 }
 0x348   :  { %v2434_v23 = vrot.slane %v2297_v17, %v4094_v3 }
 0x34a   :  { %v4084_v11 = vpop.xlane.xlu1 %2314 }
 0x34b   :  { %v2282_v46 = vpop.xlane.xlu0 %2281  ;;  %v2458_v62 = vrot.slane %v4084_v11, %v4094_v3 }
 0x34c   :  { %v2414_v55 = vrot.slane %v2282_v46, %v4094_v3 }
 0x34e   :  { %v4086_v16 = vpop.xlane.xlu1 %2320  ;;  %v2536_v4 = vsel %vm2535_vm12, %v2414_v55, %v2410_v28 }
 0x34f   :  { %v2327_v32 = vpop.xlane.xlu0 %2326  ;;  %v2538_v50 = vsel %vm2537_vm13, %v2418_v19, %v2536_v4  ;;  %v2466_v58 = vrot.slane %v4086_v16, %v4094_v3 }
 0x350   :  { %v2474_v41 = vrot.slane %v2327_v32, %v4094_v3 }
 0x352   :  { %v2306_v49 = vpop.xlane.xlu1 %2305  ;;  %v2556_v20 = vsel %vm2535_vm12, %v2478_v1, %v2474_v41 }
 0x353   :  { %v2333_v25 = vpop.xlane.xlu0 %2332  ;;  %v2446_v5 = vrot.slane %v2306_v49, %v4094_v3 }
 0x354   :  { %v2482_v33 = vrot.slane %v2333_v25, %v4094_v3 }
 0x355   :  { %v2549_v54 = vsel %vm2535_vm12, %v2446_v5, %v2442_v7 }
 0x356   :  { %v1258_v9 = vpop.xlane.xlu1 %1257  ;;  %v2550_v29 = vsel %vm2537_vm13, %v2450_v59, %v2549_v54  ;;  %v2557_v57 = vsel %vm2537_vm13, %v2482_v33, %v2556_v20 }
 0x357   :  { %1263 = vst.msk [vmem:[%s4203_s3 + $0x18] sm:$0xff] %vm1259_vm11, %v1258_v9  ;;  %v2288_v56 = vpop.xlane.xlu0 %2287 }
 0x358   :  { %v2422_v12 = vrot.slane %v2288_v56, %v4094_v3 }
 0x35a   :  { %v1271_v10 = vpop.xlane.xlu1 %1270  ;;  %v2540_v36 = vsel %vm2539_vm14, %v2422_v12, %v2538_v50 }
 0x35b   :  { %1277 = vst.msk [vmem:[%s4204_s4 + $0x8] sm:$0xff] %vm1259_vm11, %v1271_v10  ;;  %v2339_v30 = vpop.xlane.xlu0 %2338  ;;  %v2542_v60 = vsel %vm2541_vm15, %v2426_v26, %v2540_v36 }
 0x35c   :  { %v2490_v39 = vrot.slane %v2339_v30, %v4094_v3 }
 0x35e   :  { %v4102_v24 = vpop.xlane.xlu1 %2356 }
 0x35f   :  { %v2294_v45 = vpop.xlane.xlu0 %2293  ;;  %v2514_v10 = vrot.slane %v4102_v24, %v4094_v3 }
 0x360   :  { %v2430_v22 = vrot.slane %v2294_v45, %v4094_v3 }
 0x362   :  { %v2312_v0 = vpop.xlane.xlu1 %2311  ;;  %v2544_v35 = vsel %vm2543_vm0, %v2430_v22, %v2542_v60 }
 0x363   :  { %v2345_v31 = vpop.xlane.xlu0 %2344  ;;  %v2454_v34 = vrot.slane %v2312_v0, %v4094_v3  ;;  %v2546_v2 = vsel %vm2545_vm1, %v2434_v23, %v2544_v35 }
 0x364   :  { %v2498_v11 = vrot.slane %v2345_v31, %v4094_v3 }
 0x365   :  { %v2551_v8 = vsel %vm2539_vm14, %v2454_v34, %v2550_v29 }
 0x366   :  { %v4113_v43 = vpop.xlane.xlu1 %2362  ;;  %v2552_v42 = vsel %vm2541_vm15, %v2458_v62, %v2551_v8 }
 0x367   :  { %v2300_v40 = vpop.xlane.xlu0 %2299  ;;  %v2522_v45 = vrot.slane %v4113_v43, %v4094_v3 }
 0x368   :  { %v2438_v27 = vrot.slane %v2300_v40, %v4094_v3 }
 0x36a   :  { %v2318_v38 = vpop.xlane.xlu1 %2317  ;;  %v2548_v6 = vsel %vm2547_vm2, %v2438_v27, %v2546_v2 }
 0x36b   :  { %2575 = vst.msk [vmem:[%s4205_s5] sm:$0xff] %vm2574_vm3, %v2548_v6  ;;  %v2336_v48 = vpop.xlane.xlu0 %2335  ;;  %v2462_v13 = vrot.slane %v2318_v38, %v4094_v3 }
 0x36c   :  { %v2486_v61 = vrot.slane %v2336_v48, %v4094_v3 }
 0x36d   :  { %v2553_v47 = vsel %vm2543_vm0, %v2462_v13, %v2552_v42 }
 0x36e   :  { %v2369_v18 = vpop.xlane.xlu1 %2368  ;;  %v2558_v37 = vsel %vm2539_vm14, %v2486_v61, %v2557_v57  ;;  %v2554_v32 = vsel %vm2545_vm1, %v2466_v58, %v2553_v47 }
 0x36f   :  { %v2342_v52 = vpop.xlane.xlu0 %2341  ;;  %v2559_v15 = vsel %vm2541_vm15, %v2490_v39, %v2558_v37  ;;  %v2530_v26 = vrot.slane %v2369_v18, %v4094_v3 }
 0x370   :  { %v2494_v51 = vrot.slane %v2342_v52, %v4094_v3 }
 0x372   :  { %v2324_v53 = vpop.xlane.xlu1 %2323  ;;  %v2560_v44 = vsel %vm2543_vm0, %v2494_v51, %v2559_v15 }
 0x373   :  { %v2470_v17 = vrot.slane %v2324_v53, %v4094_v3  ;;  %v2348_v46 = vpop.xlane.xlu0 %2347  ;;  %v2561_v14 = vsel %vm2545_vm1, %v2498_v11, %v2560_v44 }
 0x374   :  { %v2502_v49 = vrot.slane %v2348_v46, %v4094_v3 }
 0x375   :  { %v2555_v25 = vsel %vm2547_vm2, %v2470_v17, %v2554_v32 }
 0x376   :  { %2576 = vst.msk [vmem:[%s4205_s5 + $0x8] sm:$0xff] %vm2574_vm3, %v2555_v25  ;;  %v2354_v16 = vpop.xlane.xlu1 %2353  ;;  %v2562_v21 = vsel %vm2547_vm2, %v2502_v49, %v2561_v14 }
 0x377   :  { %v2510_v9 = vrot.slane %v2354_v16, %v4094_v3  ;;  %2577 = vst.msk [vmem:[%s4205_s5 + $0x10] sm:$0xff] %vm2574_vm3, %v2562_v21  ;;  %v2351_v56 = vpop.xlane.xlu0 %2350 }
 0x378   :  { %v2506_v63 = vrot.slane %v2351_v56, %v4094_v3 }
 0x37a   :  { %v2360_v55 = vpop.xlane.xlu1 %2359  ;;  %v2563_v30 = vsel %vm2535_vm12, %v2510_v9, %v2506_v63 }
 0x37b   :  { %v2518_v28 = vrot.slane %v2360_v55, %v4094_v3  ;;  %v2564_v4 = vsel %vm2537_vm13, %v2514_v10, %v2563_v30  ;;  %v1256_v12 = vpop.xlane.xlu0 %1255 }
 0x37c   :  { %1262 = vst.msk [vmem:[%s4203_s3 + $0x10] sm:$0xff] %vm1259_vm11, %v1256_v12 }
 0x37d   :  { %v2565_v19 = vsel %vm2539_vm14, %v2518_v28, %v2564_v4 }
 0x37e   :  { %v2366_v50 = vpop.xlane.xlu1 %2365  ;;  %v2566_v0 = vsel %vm2541_vm15, %v2522_v45, %v2565_v19 }
 0x37f   :  { %v2526_v24 = vrot.slane %v2366_v50, %v4094_v3  ;;  %v1269_v36 = vpop.xlane.xlu0 %1268 }
 0x380   :  { %1276 = vst.msk [vmem:[%s4204_s4] sm:$0xff] %vm1259_vm11, %v1269_v36 }
 0x381   :  { %v2567_v22 = vsel %vm2543_vm0, %v2526_v24, %v2566_v0 }
 0x382   :  { %v2372_v31 = vpop.xlane.xlu1 %2371  ;;  %v2568_v60 = vsel %vm2545_vm1, %v2530_v26, %v2567_v22 }
 0x383   :  { %v2534_v5 = vrot.slane %v2372_v31, %v4094_v3  ;;  %v1273_v43 = vpop.xlane.xlu0 %1272 }
 0x384   :  { %1278 = vst.msk [vmem:[%s4204_s4 + $0x10] sm:$0xff] %vm1259_vm11, %v1273_v43 }
 0x385   :  { %v2569_v7 = vsel %vm2547_vm2, %v2534_v5, %v2568_v60 }
 0x386   :  { %2578 = vst.msk [vmem:[%s4205_s5 + $0x18] sm:$0xff] %vm2574_vm3, %v2569_v7  ;;  %v1275_v35 = vpop.xlane.xlu1 %1274 }
 0x387   :  { %1279 = vst.msk [vmem:[%s4204_s4 + $0x18] sm:$0xff] %vm1259_vm11, %v1275_v35 }
 0x388   :  { %3183 = dma.done.wait [#allocation5], 128  }
 0x389   :  { %3184 = vsyncadd [#allocation5], 4294967168 }
 0x38a   :  { %3185 = dma.done.wait [#allocation11], 128  }
 0x38b   :  { %3186 = vsyncadd [#allocation11], 4294967168 }
 0x38c   :  { %2621 = vsyncpa [#allocation4], 1 }
 0x38d   :  { %2622 = vsyncpa [#allocation7], 1 }
 0x38e   :  { %2623 = vsyncpa [#allocation5], 1 }
 0x38f   :  { %2624 = vsyncpa [#allocation11], 1 }

</bundles_post_ra>
